<compile_context>
chip_gen: v6e
topology: v6e:2x2x1
jax: 0.10.0
libtpu: 0.0.40
codegen_flags: <defaults>
</compile_context>

<pallas_src>
import functools

import jax
import jax.numpy as jnp
from jax.experimental import pallas as pl
from jax.experimental.pallas import tpu as pltpu

BN_EPS = 1e-5
LRELU_SLOPE = 0.2

_LANE = 128
_SUBLANE = 8


def _round_up(x, m):
    return (x + m - 1) // m * m


def _vmem_limit_bytes():
    """Generation-aware VMEM budget: ~75% of capacity (v5e/v6e ~96 MiB, v7x ~48 MiB)."""
    cap = 64 * 1024 * 1024                       # conservative: v7x per-TC capacity
    try:
        cap = int(pltpu.get_tpu_info().vmem_capacity_bytes)
    except Exception:                            # query unavailable -> keep fallback
        pass
    return max(int(cap * 3 // 4), 32 * 1024 * 1024)


def _pick_tile_m(m_total, c_pad, vmem_limit):
    """Largest multiple-of-8 divisor of m_total whose pass-2 working set
    (double-buffered bf16 in + f32 out) fits ~half the VMEM budget."""
    per_row = c_pad * (2 + 4) * 2                # bf16 in + f32 out, double buffered
    cap = (vmem_limit // 2) // per_row
    cap = max(8, min(cap, 8192, m_total))
    cap -= cap % 8
    for d in range(cap, 7, -8):
        if m_total % d == 0:
            return d
    return 8


# ---------------- Pass 1: in-kernel 3x3 conv (9 MXU taps) + channel stats ----
def _conv_stats_kernel(x_ref, w_ref, y_ref, sum_ref, sq_ref, acc_ref, *,
                       stride, hph, ho, wo, wo_pad):
    # x_ref:   (1, s*s*Hph, Wph, C_in)  bf16   phase-stacked, zero-padded image
    # w_ref:   (9, C_in, TC)            bf16   per-tap weight slices
    # y_ref:   (1, Ho*Wo_pad, TC)       bf16   conv output (flattened rows)
    # sum/sq:  (1, 1, TC)               f32    per-image per-channel partials
    # acc_ref: (Ho*Wo_pad, TC)          f32    VMEM accumulator
    s = stride
    m = ho * wo_pad
    c_in = x_ref.shape[-1]
    for kh in range(3):
        for kw in range(3):
            tap = kh * 3 + kw
            p, dh = kh % s, kh // s
            q, dw = kw % s, kw // s
            row0 = (p * s + q) * hph + dh
            xs = x_ref[0, pl.ds(row0, ho), pl.ds(dw, wo_pad), :]     # (Ho, Wo_pad, C_in)
            lhs = xs.reshape(m, c_in)                                # aligned merge (Wo_pad % 8 == 0)
            contrib = jnp.dot(lhs, w_ref[tap], preferred_element_type=jnp.float32)
            if tap == 0:
                acc_ref[...] = contrib
            else:
                acc_ref[...] += contrib
    if wo_pad != wo:
        # Zero the padded output columns so they do not pollute the batch stats
        # (they are sliced off in the wrapper anyway).
        col = jax.lax.broadcasted_iota(jnp.int32, (m, 1), 0) % wo_pad
        acc_ref[...] = jnp.where(col < wo, acc_ref[...], 0.0)
    # Re-read the VMEM scratch per use (streaming vld) instead of keeping the
    # full (M, TC) f32 value live across three uses.
    sum_ref[...] = jnp.sum(acc_ref[...], axis=0, keepdims=True).reshape(sum_ref.shape)
    sq_ref[...] = jnp.sum(acc_ref[...] * acc_ref[...], axis=0, keepdims=True).reshape(sq_ref.shape)
    y_ref[0] = acc_ref[...].astype(y_ref.dtype)


# ---------------- Pass 2: batch-norm affine + LeakyReLU ----------------------
def _bn_lrelu_kernel(y_ref, scale_ref, shift_ref, o_ref):
    z = y_ref[...].astype(jnp.float32) * scale_ref[...] + shift_ref[...]
    o_ref[...] = jnp.where(z > 0, z, LRELU_SLOPE * z).astype(o_ref.dtype)


def _phase_split(x_nchw, stride, hph, wph):
    """NCHW f32 -> phase-stacked, zero-padded NHWC bf16 of shape (N, s*s*Hph, Wph, C).

    Phase (p, q) at [i, j] holds padded-input pixel (s*i + p, s*j + q), so every
    3x3 tap becomes a unit-stride (Ho, Wo_pad) window of one phase."""
    n, c, h, w = x_nchw.shape
    s = stride
    xp = jnp.transpose(x_nchw, (0, 2, 3, 1)).astype(jnp.bfloat16)
    xp = jnp.pad(xp, ((0, 0), (1, s * hph - h - 1), (1, s * wph - w - 1), (0, 0)))
    xp = xp.reshape(n, hph, s, wph, s, c)
    xp = jnp.transpose(xp, (0, 2, 4, 1, 3, 5))           # (N, s, s, Hph, Wph, C)
    return xp.reshape(n, s * s * hph, wph, c)


@functools.partial(jax.jit, static_argnames=("stride",))
def discriminator_block(x, weight, bias, gamma, beta, *, stride):
    """Conv2d(3x3, pad=1, stride) + BatchNorm2d(train) + LeakyReLU(0.2).

    x: (N, C_in, H, W); weight: (C_out, C_in, 3, 3); bias/gamma/beta: (C_out,)
    returns (N, C_out, H_out, W_out) float32 (matching the PyTorch module)."""
    del bias  # Pre-BN per-channel bias cancels exactly under train-mode BatchNorm.

    n, c_in, h, w = x.shape
    c_out = weight.shape[0]
    s = int(stride)

    ho = (h - 1) // s + 1
    wo = (w - 1) // s + 1
    wo_pad = _round_up(wo, _SUBLANE)      # sublane-aligned flattened rows
    hph = ho + 2 // s                     # haloed rows per stride-phase
    wph = wo_pad + 2 // s
    m_img = ho * wo_pad                   # flattened output rows per image
    m_valid = n * ho * wo                 # true element count for batch stats

    c_pad = _round_up(c_out, _LANE)       # lane-dense output / full MXU N
    tc = 256 if c_pad % 256 == 0 else _LANE
    n_ct = c_pad // tc

    vmem_limit = _vmem_limit_bytes()

    # ---- wrapper-side prep (single pass each; no im2col) ---------------------
    xph = _phase_split(x, s, hph, wph)                               # (N, s*s*Hph, Wph, C_in) bf16
    w_taps = jnp.transpose(weight, (2, 3, 1, 0)).reshape(9, c_in, c_out)
    w_taps = jnp.pad(w_taps, ((0, 0), (0, 0), (0, c_pad - c_out))).astype(jnp.bfloat16)

    # ---- pass 1: conv + per-image channel stats -------------------------------
    kernel1 = functools.partial(_conv_stats_kernel, stride=s, hph=hph,
                                ho=ho, wo=wo, wo_pad=wo_pad)
    y, psum, psq = pl.pallas_call(
        kernel1,
        out_shape=(
            jax.ShapeDtypeStruct((n, m_img, c_pad), jnp.bfloat16),
            jax.ShapeDtypeStruct((n, 1, c_pad), jnp.float32),
            jax.ShapeDtypeStruct((n, 1, c_pad), jnp.float32),
        ),
        grid=(n, n_ct),
        in_specs=[
            pl.BlockSpec((1, s * s * hph, wph, c_in), lambda b, c: (b, 0, 0, 0)),
            pl.BlockSpec((9, c_in, tc), lambda b, c: (0, 0, c)),
        ],
        out_specs=(
            pl.BlockSpec((1, m_img, tc), lambda b, c: (b, 0, c)),
            pl.BlockSpec((1, 1, tc), lambda b, c: (b, 0, c)),
            pl.BlockSpec((1, 1, tc), lambda b, c: (b, 0, c)),
        ),
        scratch_shapes=[pltpu.VMEM((m_img, tc), jnp.float32)],
        compiler_params=pltpu.CompilerParams(
            dimension_semantics=("parallel", "parallel"),
            vmem_limit_bytes=vmem_limit),
    )(xph, w_taps)

    # ---- tiny XLA-side reduction: batch statistics (f32) ----------------------
    total = jnp.sum(psum, axis=(0, 1))                   # (C_pad,)
    total_sq = jnp.sum(psq, axis=(0, 1))
    mean = total / m_valid
    var = jnp.maximum(total_sq / m_valid - mean * mean, 0.0)
    rstd = jax.lax.rsqrt(var + BN_EPS)
    gamma_p = jnp.pad(gamma.astype(jnp.float32), (0, c_pad - c_out))
    beta_p = jnp.pad(beta.astype(jnp.float32), (0, c_pad - c_out))
    scale = (gamma_p * rstd).reshape(1, c_pad)
    shift = (beta_p - mean * gamma_p * rstd).reshape(1, c_pad)

    # ---- pass 2: normalize + LeakyReLU, big lane-dense streaming tiles --------
    m_total = n * m_img
    tm = _pick_tile_m(m_total, c_pad, vmem_limit)
    out = pl.pallas_call(
        _bn_lrelu_kernel,
        out_shape=jax.ShapeDtypeStruct((m_total, c_pad), jnp.float32),
        grid=(m_total // tm,),
        in_specs=[
            pl.BlockSpec((tm, c_pad), lambda i: (i, 0)),
            pl.BlockSpec((1, c_pad), lambda i: (0, 0)),
            pl.BlockSpec((1, c_pad), lambda i: (0, 0)),
        ],
        out_specs=pl.BlockSpec((tm, c_pad), lambda i: (i, 0)),
        compiler_params=pltpu.CompilerParams(
            dimension_semantics=("parallel",),
            vmem_limit_bytes=vmem_limit),
    )(y.reshape(m_total, c_pad), scale, shift)

    out = out.reshape(n, ho, wo_pad, c_pad)[:, :, :wo, :c_out]
    # TODO(synk): keep NHWC across the stack to drop this transpose round-trip.
    return jnp.transpose(out, (0, 3, 1, 2))


def _reference(x, weight, bias, gamma, beta, stride):
    """Pure-JAX f32 reference (lax conv + batch-stat BN + leaky relu)."""
    y = jax.lax.conv_general_dilated(
        x, weight, window_strides=(stride, stride), padding=((1, 1), (1, 1)),
        dimension_numbers=("NCHW", "OIHW", "NCHW"))
    y = y + bias.reshape(1, -1, 1, 1)
    mean = jnp.mean(y, axis=(0, 2, 3), keepdims=True)
    var = jnp.mean((y - mean) ** 2, axis=(0, 2, 3), keepdims=True)
    y = (y - mean) * jax.lax.rsqrt(var + BN_EPS)
    y = y * gamma.reshape(1, -1, 1, 1) + beta.reshape(1, -1, 1, 1)
    return jnp.where(y > 0, y, LRELU_SLOPE * y)


if __name__ == "__main__":
    key = jax.random.PRNGKey(0)
    k_x, k_w, k_b = jax.random.split(key, 3)

    N, C_IN, H, W = 2, 4, 16, 16
    C_OUT = 8
    STRIDE = 2

    x = jax.random.normal(k_x, (N, C_IN, H, W), dtype=jnp.float32)

    # Deterministic parameter init (uniform, fan-in bound like PyTorch defaults).
    fan_in = C_IN * 3 * 3
    bound = 1.0 / (fan_in ** 0.5)
    weight = jax.random.uniform(k_w, (C_OUT, C_IN, 3, 3), jnp.float32, -bound, bound)
    bias = jax.random.uniform(k_b, (C_OUT,), jnp.float32, -bound, bound)
    gamma = jnp.ones((C_OUT,), jnp.float32)   # nn.BatchNorm2d default weight
    beta = jnp.zeros((C_OUT,), jnp.float32)   # nn.BatchNorm2d default bias

    out = discriminator_block(x, weight, bias, gamma, beta, stride=STRIDE)
    out = jax.block_until_ready(out)

    ref = _reference(x, weight, bias, gamma, beta, STRIDE)
    assert out.shape == (N, C_OUT, H // STRIDE, W // STRIDE), out.shape
    # Tolerance loosened vs the f32 reference because the MXU operands are bf16
    # (accumulation stays f32); observed error is ~1e-2 at these magnitudes.
    err = float(jnp.max(jnp.abs(out - ref)))
    assert jnp.allclose(out, ref, atol=5e-2, rtol=5e-2), err

    print("KERNEL_OK")
</pallas_src>

<mosaic_0001>
module attributes {stable_mosaic.version = 11 : i64} {
  func.func @_conv_stats_kernel(%arg0: i32, %arg1: i32, %arg2: memref<1x36x9x4xbf16, #tpu.memory_space<vmem>>, %arg3: memref<9x4x128xbf16, #tpu.memory_space<vmem>>, %arg4: memref<1x64x128xbf16, #tpu.memory_space<vmem>>, %arg5: memref<1x1x128xf32, #tpu.memory_space<vmem>>, %arg6: memref<1x1x128xf32, #tpu.memory_space<vmem>>, %arg7: memref<64x128xf32, #tpu.memory_space<vmem>>) attributes {dimension_semantics = [#tpu.dimension_semantics<parallel>, #tpu.dimension_semantics<parallel>], iteration_bounds = array<i64: 2, 1>, scalar_prefetch = 0 : i64, scratch_operands = 1 : i64, tpu.core_type = #tpu.core_type<tc>, window_params = [{transform_indices = @transform_0, window_bounds = array<i64: 1, 36, 9, 4>}, {transform_indices = @transform_1, window_bounds = array<i64: 9, 4, 128>}, {transform_indices = @transform_2, window_bounds = array<i64: 1, 64, 128>}, {transform_indices = @transform_3, window_bounds = array<i64: 1, 1, 128>}, {transform_indices = @transform_4, window_bounds = array<i64: 1, 1, 128>}]} {
    %c0 = arith.constant 0 : index
    %c0_0 = arith.constant 0 : index
    %c0_1 = arith.constant 0 : index
    %c0_2 = arith.constant 0 : index
    %0 = vector.load %arg2[%c0, %c0_0, %c0_1, %c0_2] : memref<1x36x9x4xbf16, #tpu.memory_space<vmem>>, vector<1x8x8x4xbf16>
    %1 = vector.shape_cast %0 : vector<1x8x8x4xbf16> to vector<8x8x4xbf16>
    %2 = vector.shape_cast %1 : vector<8x8x4xbf16> to vector<64x4xbf16>
    %c0_3 = arith.constant 0 : index
    %c0_4 = arith.constant 0 : index
    %c0_5 = arith.constant 0 : index
    %3 = vector.load %arg3[%c0_3, %c0_4, %c0_5] : memref<9x4x128xbf16, #tpu.memory_space<vmem>>, vector<1x4x128xbf16>
    %4 = vector.shape_cast %3 : vector<1x4x128xbf16> to vector<4x128xbf16>
    %cst = arith.constant dense<0.000000e+00> : vector<64x128xf32>
    %5 = tpu.matmul %2, %4, %cst {dimension_numbers = #tpu.dot_dimension_numbers<[1], [0], [0], [1], [0, 0, 1, 1], [], []>} : vector<64x4xbf16>, vector<4x128xbf16>, vector<64x128xf32> -> vector<64x128xf32>
    %c0_6 = arith.constant 0 : index
    %c0_7 = arith.constant 0 : index
    %6 = vector.load %arg7[%c0_6, %c0_7] : memref<64x128xf32, #tpu.memory_space<vmem>>, vector<64x128xf32>
    tpu.vector_store %arg7[%c0_6, %c0_7], %5 {strides = array<i32>} : memref<64x128xf32, #tpu.memory_space<vmem>>, vector<64x128xf32>,
    %c0_8 = arith.constant 0 : index
    %c9 = arith.constant 9 : index
    %c0_9 = arith.constant 0 : index
    %c0_10 = arith.constant 0 : index
    %7 = vector.load %arg2[%c0_8, %c9, %c0_9, %c0_10] : memref<1x36x9x4xbf16, #tpu.memory_space<vmem>>, vector<1x8x8x4xbf16>
    %8 = vector.shape_cast %7 : vector<1x8x8x4xbf16> to vector<8x8x4xbf16>
    %9 = vector.shape_cast %8 : vector<8x8x4xbf16> to vector<64x4xbf16>
    %c1 = arith.constant 1 : index
    %c0_11 = arith.constant 0 : index
    %c0_12 = arith.constant 0 : index
    %10 = vector.load %arg3[%c1, %c0_11, %c0_12] : memref<9x4x128xbf16, #tpu.memory_space<vmem>>, vector<1x4x128xbf16>
    %11 = vector.shape_cast %10 : vector<1x4x128xbf16> to vector<4x128xbf16>
    %cst_13 = arith.constant dense<0.000000e+00> : vector<64x128xf32>
    %12 = tpu.matmul %9, %11, %cst_13 {dimension_numbers = #tpu.dot_dimension_numbers<[1], [0], [0], [1], [0, 0, 1, 1], [], []>} : vector<64x4xbf16>, vector<4x128xbf16>, vector<64x128xf32> -> vector<64x128xf32>
    %c0_14 = arith.constant 0 : index
    %c0_15 = arith.constant 0 : index
    %13 = vector.load %arg7[%c0_14, %c0_15] : memref<64x128xf32, #tpu.memory_space<vmem>>, vector<64x128xf32>
    %14 = arith.addf %13, %12 : vector<64x128xf32>
    %c0_16 = arith.constant 0 : index
    %c0_17 = arith.constant 0 : index
    %15 = vector.load %arg7[%c0_16, %c0_17] : memref<64x128xf32, #tpu.memory_space<vmem>>, vector<64x128xf32>
    tpu.vector_store %arg7[%c0_16, %c0_17], %14 {strides = array<i32>} : memref<64x128xf32, #tpu.memory_space<vmem>>, vector<64x128xf32>,
    %c0_18 = arith.constant 0 : index
    %c0_19 = arith.constant 0 : index
    %c1_20 = arith.constant 1 : index
    %c0_21 = arith.constant 0 : index
    %16 = vector.load %arg2[%c0_18, %c0_19, %c1_20, %c0_21] : memref<1x36x9x4xbf16, #tpu.memory_space<vmem>>, vector<1x8x8x4xbf16>
    %17 = vector.shape_cast %16 : vector<1x8x8x4xbf16> to vector<8x8x4xbf16>
    %18 = vector.shape_cast %17 : vector<8x8x4xbf16> to vector<64x4xbf16>
    %c2 = arith.constant 2 : index
    %c0_22 = arith.constant 0 : index
    %c0_23 = arith.constant 0 : index
    %19 = vector.load %arg3[%c2, %c0_22, %c0_23] : memref<9x4x128xbf16, #tpu.memory_space<vmem>>, vector<1x4x128xbf16>
    %20 = vector.shape_cast %19 : vector<1x4x128xbf16> to vector<4x128xbf16>
    %cst_24 = arith.constant dense<0.000000e+00> : vector<64x128xf32>
    %21 = tpu.matmul %18, %20, %cst_24 {dimension_numbers = #tpu.dot_dimension_numbers<[1], [0], [0], [1], [0, 0, 1, 1], [], []>} : vector<64x4xbf16>, vector<4x128xbf16>, vector<64x128xf32> -> vector<64x128xf32>
    %c0_25 = arith.constant 0 : index
    %c0_26 = arith.constant 0 : index
    %22 = vector.load %arg7[%c0_25, %c0_26] : memref<64x128xf32, #tpu.memory_space<vmem>>, vector<64x128xf32>
    %23 = arith.addf %22, %21 : vector<64x128xf32>
    %c0_27 = arith.constant 0 : index
    %c0_28 = arith.constant 0 : index
    %24 = vector.load %arg7[%c0_27, %c0_28] : memref<64x128xf32, #tpu.memory_space<vmem>>, vector<64x128xf32>
    tpu.vector_store %arg7[%c0_27, %c0_28], %23 {strides = array<i32>} : memref<64x128xf32, #tpu.memory_space<vmem>>, vector<64x128xf32>,
    %c0_29 = arith.constant 0 : index
    %c18 = arith.constant 18 : index
    %c0_30 = arith.constant 0 : index
    %c0_31 = arith.constant 0 : index
    %25 = vector.load %arg2[%c0_29, %c18, %c0_30, %c0_31] : memref<1x36x9x4xbf16, #tpu.memory_space<vmem>>, vector<1x8x8x4xbf16>
    %26 = vector.shape_cast %25 : vector<1x8x8x4xbf16> to vector<8x8x4xbf16>
    %27 = vector.shape_cast %26 : vector<8x8x4xbf16> to vector<64x4xbf16>
    %c3 = arith.constant 3 : index
    %c0_32 = arith.constant 0 : index
    %c0_33 = arith.constant 0 : index
    %28 = vector.load %arg3[%c3, %c0_32, %c0_33] : memref<9x4x128xbf16, #tpu.memory_space<vmem>>, vector<1x4x128xbf16>
    %29 = vector.shape_cast %28 : vector<1x4x128xbf16> to vector<4x128xbf16>
    %cst_34 = arith.constant dense<0.000000e+00> : vector<64x128xf32>
    %30 = tpu.matmul %27, %29, %cst_34 {dimension_numbers = #tpu.dot_dimension_numbers<[1], [0], [0], [1], [0, 0, 1, 1], [], []>} : vector<64x4xbf16>, vector<4x128xbf16>, vector<64x128xf32> -> vector<64x128xf32>
    %c0_35 = arith.constant 0 : index
    %c0_36 = arith.constant 0 : index
    %31 = vector.load %arg7[%c0_35, %c0_36] : memref<64x128xf32, #tpu.memory_space<vmem>>, vector<64x128xf32>
    %32 = arith.addf %31, %30 : vector<64x128xf32>
    %c0_37 = arith.constant 0 : index
    %c0_38 = arith.constant 0 : index
    %33 = vector.load %arg7[%c0_37, %c0_38] : memref<64x128xf32, #tpu.memory_space<vmem>>, vector<64x128xf32>
    tpu.vector_store %arg7[%c0_37, %c0_38], %32 {strides = array<i32>} : memref<64x128xf32, #tpu.memory_space<vmem>>, vector<64x128xf32>,
    %c0_39 = arith.constant 0 : index
    %c27 = arith.constant 27 : index
    %c0_40 = arith.constant 0 : index
    %c0_41 = arith.constant 0 : index
    %34 = vector.load %arg2[%c0_39, %c27, %c0_40, %c0_41] : memref<1x36x9x4xbf16, #tpu.memory_space<vmem>>, vector<1x8x8x4xbf16>
    %35 = vector.shape_cast %34 : vector<1x8x8x4xbf16> to vector<8x8x4xbf16>
    %36 = vector.shape_cast %35 : vector<8x8x4xbf16> to vector<64x4xbf16>
    %c4 = arith.constant 4 : index
    %c0_42 = arith.constant 0 : index
    %c0_43 = arith.constant 0 : index
    %37 = vector.load %arg3[%c4, %c0_42, %c0_43] : memref<9x4x128xbf16, #tpu.memory_space<vmem>>, vector<1x4x128xbf16>
    %38 = vector.shape_cast %37 : vector<1x4x128xbf16> to vector<4x128xbf16>
    %cst_44 = arith.constant dense<0.000000e+00> : vector<64x128xf32>
    %39 = tpu.matmul %36, %38, %cst_44 {dimension_numbers = #tpu.dot_dimension_numbers<[1], [0], [0], [1], [0, 0, 1, 1], [], []>} : vector<64x4xbf16>, vector<4x128xbf16>, vector<64x128xf32> -> vector<64x128xf32>
    %c0_45 = arith.constant 0 : index
    %c0_46 = arith.constant 0 : index
    %40 = vector.load %arg7[%c0_45, %c0_46] : memref<64x128xf32, #tpu.memory_space<vmem>>, vector<64x128xf32>
    %41 = arith.addf %40, %39 : vector<64x128xf32>
    %c0_47 = arith.constant 0 : index
    %c0_48 = arith.constant 0 : index
    %42 = vector.load %arg7[%c0_47, %c0_48] : memref<64x128xf32, #tpu.memory_space<vmem>>, vector<64x128xf32>
    tpu.vector_store %arg7[%c0_47, %c0_48], %41 {strides = array<i32>} : memref<64x128xf32, #tpu.memory_space<vmem>>, vector<64x128xf32>,
    %c0_49 = arith.constant 0 : index
    %c18_50 = arith.constant 18 : index
    %c1_51 = arith.constant 1 : index
    %c0_52 = arith.constant 0 : index
    %43 = vector.load %arg2[%c0_49, %c18_50, %c1_51, %c0_52] : memref<1x36x9x4xbf16, #tpu.memory_space<vmem>>, vector<1x8x8x4xbf16>
    %44 = vector.shape_cast %43 : vector<1x8x8x4xbf16> to vector<8x8x4xbf16>
    %45 = vector.shape_cast %44 : vector<8x8x4xbf16> to vector<64x4xbf16>
    %c5 = arith.constant 5 : index
    %c0_53 = arith.constant 0 : index
    %c0_54 = arith.constant 0 : index
    %46 = vector.load %arg3[%c5, %c0_53, %c0_54] : memref<9x4x128xbf16, #tpu.memory_space<vmem>>, vector<1x4x128xbf16>
    %47 = vector.shape_cast %46 : vector<1x4x128xbf16> to vector<4x128xbf16>
    %cst_55 = arith.constant dense<0.000000e+00> : vector<64x128xf32>
    %48 = tpu.matmul %45, %47, %cst_55 {dimension_numbers = #tpu.dot_dimension_numbers<[1], [0], [0], [1], [0, 0, 1, 1], [], []>} : vector<64x4xbf16>, vector<4x128xbf16>, vector<64x128xf32> -> vector<64x128xf32>
    %c0_56 = arith.constant 0 : index
    %c0_57 = arith.constant 0 : index
    %49 = vector.load %arg7[%c0_56, %c0_57] : memref<64x128xf32, #tpu.memory_space<vmem>>, vector<64x128xf32>
    %50 = arith.addf %49, %48 : vector<64x128xf32>
    %c0_58 = arith.constant 0 : index
    %c0_59 = arith.constant 0 : index
    %51 = vector.load %arg7[%c0_58, %c0_59] : memref<64x128xf32, #tpu.memory_space<vmem>>, vector<64x128xf32>
    tpu.vector_store %arg7[%c0_58, %c0_59], %50 {strides = array<i32>} : memref<64x128xf32, #tpu.memory_space<vmem>>, vector<64x128xf32>,
    %c0_60 = arith.constant 0 : index
    %c1_61 = arith.constant 1 : index
    %c0_62 = arith.constant 0 : index
    %c0_63 = arith.constant 0 : index
    %52 = vector.load %arg2[%c0_60, %c1_61, %c0_62, %c0_63] : memref<1x36x9x4xbf16, #tpu.memory_space<vmem>>, vector<1x8x8x4xbf16>
    %53 = vector.shape_cast %52 : vector<1x8x8x4xbf16> to vector<8x8x4xbf16>
    %54 = vector.shape_cast %53 : vector<8x8x4xbf16> to vector<64x4xbf16>
    %c6 = arith.constant 6 : index
    %c0_64 = arith.constant 0 : index
    %c0_65 = arith.constant 0 : index
    %55 = vector.load %arg3[%c6, %c0_64, %c0_65] : memref<9x4x128xbf16, #tpu.memory_space<vmem>>, vector<1x4x128xbf16>
    %56 = vector.shape_cast %55 : vector<1x4x128xbf16> to vector<4x128xbf16>
    %cst_66 = arith.constant dense<0.000000e+00> : vector<64x128xf32>
    %57 = tpu.matmul %54, %56, %cst_66 {dimension_numbers = #tpu.dot_dimension_numbers<[1], [0], [0], [1], [0, 0, 1, 1], [], []>} : vector<64x4xbf16>, vector<4x128xbf16>, vector<64x128xf32> -> vector<64x128xf32>
    %c0_67 = arith.constant 0 : index
    %c0_68 = arith.constant 0 : index
    %58 = vector.load %arg7[%c0_67, %c0_68] : memref<64x128xf32, #tpu.memory_space<vmem>>, vector<64x128xf32>
    %59 = arith.addf %58, %57 : vector<64x128xf32>
    %c0_69 = arith.constant 0 : index
    %c0_70 = arith.constant 0 : index
    %60 = vector.load %arg7[%c0_69, %c0_70] : memref<64x128xf32, #tpu.memory_space<vmem>>, vector<64x128xf32>
    tpu.vector_store %arg7[%c0_69, %c0_70], %59 {strides = array<i32>} : memref<64x128xf32, #tpu.memory_space<vmem>>, vector<64x128xf32>,
    %c0_71 = arith.constant 0 : index
    %c10 = arith.constant 10 : index
    %c0_72 = arith.constant 0 : index
    %c0_73 = arith.constant 0 : index
    %61 = vector.load %arg2[%c0_71, %c10, %c0_72, %c0_73] : memref<1x36x9x4xbf16, #tpu.memory_space<vmem>>, vector<1x8x8x4xbf16>
    %62 = vector.shape_cast %61 : vector<1x8x8x4xbf16> to vector<8x8x4xbf16>
    %63 = vector.shape_cast %62 : vector<8x8x4xbf16> to vector<64x4xbf16>
    %c7 = arith.constant 7 : index
    %c0_74 = arith.constant 0 : index
    %c0_75 = arith.constant 0 : index
    %64 = vector.load %arg3[%c7, %c0_74, %c0_75] : memref<9x4x128xbf16, #tpu.memory_space<vmem>>, vector<1x4x128xbf16>
    %65 = vector.shape_cast %64 : vector<1x4x128xbf16> to vector<4x128xbf16>
    %cst_76 = arith.constant dense<0.000000e+00> : vector<64x128xf32>
    %66 = tpu.matmul %63, %65, %cst_76 {dimension_numbers = #tpu.dot_dimension_numbers<[1], [0], [0], [1], [0, 0, 1, 1], [], []>} : vector<64x4xbf16>, vector<4x128xbf16>, vector<64x128xf32> -> vector<64x128xf32>
    %c0_77 = arith.constant 0 : index
    %c0_78 = arith.constant 0 : index
    %67 = vector.load %arg7[%c0_77, %c0_78] : memref<64x128xf32, #tpu.memory_space<vmem>>, vector<64x128xf32>
    %68 = arith.addf %67, %66 : vector<64x128xf32>
    %c0_79 = arith.constant 0 : index
    %c0_80 = arith.constant 0 : index
    %69 = vector.load %arg7[%c0_79, %c0_80] : memref<64x128xf32, #tpu.memory_space<vmem>>, vector<64x128xf32>
    tpu.vector_store %arg7[%c0_79, %c0_80], %68 {strides = array<i32>} : memref<64x128xf32, #tpu.memory_space<vmem>>, vector<64x128xf32>,
    %c0_81 = arith.constant 0 : index
    %c1_82 = arith.constant 1 : index
    %c1_83 = arith.constant 1 : index
    %c0_84 = arith.constant 0 : index
    %70 = vector.load %arg2[%c0_81, %c1_82, %c1_83, %c0_84] : memref<1x36x9x4xbf16, #tpu.memory_space<vmem>>, vector<1x8x8x4xbf16>
    %71 = vector.shape_cast %70 : vector<1x8x8x4xbf16> to vector<8x8x4xbf16>
    %72 = vector.shape_cast %71 : vector<8x8x4xbf16> to vector<64x4xbf16>
    %c8 = arith.constant 8 : index
    %c0_85 = arith.constant 0 : index
    %c0_86 = arith.constant 0 : index
    %73 = vector.load %arg3[%c8, %c0_85, %c0_86] : memref<9x4x128xbf16, #tpu.memory_space<vmem>>, vector<1x4x128xbf16>
    %74 = vector.shape_cast %73 : vector<1x4x128xbf16> to vector<4x128xbf16>
    %cst_87 = arith.constant dense<0.000000e+00> : vector<64x128xf32>
    %75 = tpu.matmul %72, %74, %cst_87 {dimension_numbers = #tpu.dot_dimension_numbers<[1], [0], [0], [1], [0, 0, 1, 1], [], []>} : vector<64x4xbf16>, vector<4x128xbf16>, vector<64x128xf32> -> vector<64x128xf32>
    %c0_88 = arith.constant 0 : index
    %c0_89 = arith.constant 0 : index
    %76 = vector.load %arg7[%c0_88, %c0_89] : memref<64x128xf32, #tpu.memory_space<vmem>>, vector<64x128xf32>
    %77 = arith.addf %76, %75 : vector<64x128xf32>
    %c0_90 = arith.constant 0 : index
    %c0_91 = arith.constant 0 : index
    %78 = vector.load %arg7[%c0_90, %c0_91] : memref<64x128xf32, #tpu.memory_space<vmem>>, vector<64x128xf32>
    tpu.vector_store %arg7[%c0_90, %c0_91], %77 {strides = array<i32>} : memref<64x128xf32, #tpu.memory_space<vmem>>, vector<64x128xf32>,
    %c0_92 = arith.constant 0 : index
    %c0_93 = arith.constant 0 : index
    %79 = vector.load %arg7[%c0_92, %c0_93] : memref<64x128xf32, #tpu.memory_space<vmem>>, vector<64x128xf32>
    %cst_94 = arith.constant dense<0.000000e+00> : vector<128xf32>
    %80 = vector.multi_reduction <add>, %79, %cst_94 [0] : vector<64x128xf32> to vector<128xf32>
    %81 = vector.shape_cast %80 : vector<128xf32> to vector<1x128xf32>
    %82 = vector.shape_cast %81 : vector<1x128xf32> to vector<1x1x128xf32>
    %c0_95 = arith.constant 0 : index
    %c0_96 = arith.constant 0 : index
    %c0_97 = arith.constant 0 : index
    %83 = vector.load %arg5[%c0_95, %c0_96, %c0_97] : memref<1x1x128xf32, #tpu.memory_space<vmem>>, vector<1x1x128xf32>
    tpu.vector_store %arg5[%c0_95, %c0_96, %c0_97], %82 {strides = array<i32>} : memref<1x1x128xf32, #tpu.memory_space<vmem>>, vector<1x1x128xf32>,
    %c0_98 = arith.constant 0 : index
    %c0_99 = arith.constant 0 : index
    %84 = vector.load %arg7[%c0_98, %c0_99] : memref<64x128xf32, #tpu.memory_space<vmem>>, vector<64x128xf32>
    %c0_100 = arith.constant 0 : index
    %c0_101 = arith.constant 0 : index
    %85 = vector.load %arg7[%c0_100, %c0_101] : memref<64x128xf32, #tpu.memory_space<vmem>>, vector<64x128xf32>
    %86 = arith.mulf %84, %85 : vector<64x128xf32>
    %cst_102 = arith.constant dense<0.000000e+00> : vector<128xf32>
    %87 = vector.multi_reduction <add>, %86, %cst_102 [0] : vector<64x128xf32> to vector<128xf32>
    %88 = vector.shape_cast %87 : vector<128xf32> to vector<1x128xf32>
    %89 = vector.shape_cast %88 : vector<1x128xf32> to vector<1x1x128xf32>
    %c0_103 = arith.constant 0 : index
    %c0_104 = arith.constant 0 : index
    %c0_105 = arith.constant 0 : index
    %90 = vector.load %arg6[%c0_103, %c0_104, %c0_105] : memref<1x1x128xf32, #tpu.memory_space<vmem>>, vector<1x1x128xf32>
    tpu.vector_store %arg6[%c0_103, %c0_104, %c0_105], %89 {strides = array<i32>} : memref<1x1x128xf32, #tpu.memory_space<vmem>>, vector<1x1x128xf32>,
    %c0_106 = arith.constant 0 : index
    %c0_107 = arith.constant 0 : index
    %91 = vector.load %arg7[%c0_106, %c0_107] : memref<64x128xf32, #tpu.memory_space<vmem>>, vector<64x128xf32>
    %92 = arith.truncf %91 : vector<64x128xf32> to vector<64x128xbf16>
    %c0_108 = arith.constant 0 : index
    %c0_109 = arith.constant 0 : index
    %c0_110 = arith.constant 0 : index
    %93 = vector.load %arg4[%c0_108, %c0_109, %c0_110] : memref<1x64x128xbf16, #tpu.memory_space<vmem>>, vector<1x64x128xbf16>
    %94 = vector.shape_cast %93 : vector<1x64x128xbf16> to vector<64x128xbf16>
    %95 = vector.shape_cast %92 : vector<64x128xbf16> to vector<1x64x128xbf16>
    tpu.vector_store %arg4[%c0_108, %c0_109, %c0_110], %95 {strides = array<i32>} : memref<1x64x128xbf16, #tpu.memory_space<vmem>>, vector<1x64x128xbf16>,
    return
  }
  func.func @transform_0(%arg0: i32, %arg1: i32) -> (i32, i32, i32, i32) {
    %c0_i32 = arith.constant 0 : i32
    %c0_i32_0 = arith.constant 0 : i32
    %c0_i32_1 = arith.constant 0 : i32
    %c0_i32_2 = arith.constant 0 : i32
    return %arg0, %c0_i32, %c0_i32_0, %c0_i32_1 : i32, i32, i32, i32
  }
  func.func @transform_1(%arg0: i32, %arg1: i32) -> (i32, i32, i32) {
    %c0_i32 = arith.constant 0 : i32
    %c0_i32_0 = arith.constant 0 : i32
    %c0_i32_1 = arith.constant 0 : i32
    return %c0_i32, %c0_i32_0, %arg1 : i32, i32, i32
  }
  func.func @transform_2(%arg0: i32, %arg1: i32) -> (i32, i32, i32) {
    %c0_i32 = arith.constant 0 : i32
    %c0_i32_0 = arith.constant 0 : i32
    return %arg0, %c0_i32, %arg1 : i32, i32, i32
  }
  func.func @transform_3(%arg0: i32, %arg1: i32) -> (i32, i32, i32) {
    %c0_i32 = arith.constant 0 : i32
    %c0_i32_0 = arith.constant 0 : i32
    return %arg0, %c0_i32, %arg1 : i32, i32, i32
  }
  func.func @transform_4(%arg0: i32, %arg1: i32) -> (i32, i32, i32) {
    %c0_i32 = arith.constant 0 : i32
    %c0_i32_0 = arith.constant 0 : i32
    return %arg0, %c0_i32, %arg1 : i32, i32, i32
  }
}

module attributes {stable_mosaic.version = 11 : i64} {
  func.func @_bn_lrelu_kernel(%arg0: i32, %arg1: memref<128x128xbf16, #tpu.memory_space<vmem>>, %arg2: memref<1x128xf32, #tpu.memory_space<vmem>>, %arg3: memref<1x128xf32, #tpu.memory_space<vmem>>, %arg4: memref<128x128xf32, #tpu.memory_space<vmem>>) attributes {dimension_semantics = [#tpu.dimension_semantics<parallel>], iteration_bounds = array<i64: 1>, scalar_prefetch = 0 : i64, scratch_operands = 0 : i64, tpu.core_type = #tpu.core_type<tc>, window_params = [{transform_indices = @transform_0, window_bounds = array<i64: 128, 128>}, {pipeline_mode = #tpu.pipeline_mode<synchronous>, transform_indices = @transform_1, window_bounds = array<i64: 1, 128>}, {pipeline_mode = #tpu.pipeline_mode<synchronous>, transform_indices = @transform_2, window_bounds = array<i64: 1, 128>}, {transform_indices = @transform_3, window_bounds = array<i64: 128, 128>}]} {
    %c0 = arith.constant 0 : index
    %c0_0 = arith.constant 0 : index
    %0 = vector.load %arg1[%c0, %c0_0] : memref<128x128xbf16, #tpu.memory_space<vmem>>, vector<128x128xbf16>
    %1 = arith.extf %0 : vector<128x128xbf16> to vector<128x128xf32>
    %c0_1 = arith.constant 0 : index
    %c0_2 = arith.constant 0 : index
    %2 = vector.load %arg2[%c0_1, %c0_2] : memref<1x128xf32, #tpu.memory_space<vmem>>, vector<1x128xf32>
    %3 = vector.broadcast %2 : vector<1x128xf32> to vector<128x128xf32>
    %4 = arith.mulf %1, %3 : vector<128x128xf32>
    %c0_3 = arith.constant 0 : index
    %c0_4 = arith.constant 0 : index
    %5 = vector.load %arg3[%c0_3, %c0_4] : memref<1x128xf32, #tpu.memory_space<vmem>>, vector<1x128xf32>
    %6 = vector.broadcast %5 : vector<1x128xf32> to vector<128x128xf32>
    %7 = arith.addf %4, %6 : vector<128x128xf32>
    %cst = arith.constant 0.000000e+00 : f32
    %8 = vector.broadcast %cst : f32 to vector<128x128xf32>
    %9 = arith.cmpf ogt, %7, %8 : vector<128x128xf32>
    %cst_5 = arith.constant 2.000000e-01 : f32
    %10 = vector.broadcast %cst_5 : f32 to vector<128x128xf32>
    %11 = arith.mulf %10, %7 : vector<128x128xf32>
    %12 = arith.select %9, %7, %11 : vector<128x128xi1>, vector<128x128xf32>
    %c0_6 = arith.constant 0 : index
    %c0_7 = arith.constant 0 : index
    %13 = vector.load %arg4[%c0_6, %c0_7] : memref<128x128xf32, #tpu.memory_space<vmem>>, vector<128x128xf32>
    tpu.vector_store %arg4[%c0_6, %c0_7], %12 {strides = array<i32>} : memref<128x128xf32, #tpu.memory_space<vmem>>, vector<128x128xf32>,
    return
  }
  func.func @transform_0(%arg0: i32) -> (i32, i32) {
    %c0_i32 = arith.constant 0 : i32
    %c0_i32_0 = arith.constant 0 : i32
    return %arg0, %c0_i32 : i32, i32
  }
  func.func @transform_1(%arg0: i32) -> (i32, i32) {
    %c0_i32 = arith.constant 0 : i32
    %c0_i32_0 = arith.constant 0 : i32
    %c0_i32_1 = arith.constant 0 : i32
    return %c0_i32, %c0_i32_0 : i32, i32
  }
  func.func @transform_2(%arg0: i32) -> (i32, i32) {
    %c0_i32 = arith.constant 0 : i32
    %c0_i32_0 = arith.constant 0 : i32
    %c0_i32_1 = arith.constant 0 : i32
    return %c0_i32, %c0_i32_0 : i32, i32
  }
  func.func @transform_3(%arg0: i32) -> (i32, i32) {
    %c0_i32 = arith.constant 0 : i32
    %c0_i32_0 = arith.constant 0 : i32
    return %arg0, %c0_i32 : i32, i32
  }
}

</mosaic_0001>

<bundles_post_ra>
// kernel: discriminator_block.3
= control target key start
LH: loop header
LB: loop body
LE: loop exit
PB: predicated region body
PF: predicated region fallthrough
CT: control target
= control target key end

     0   :  { %s335_s0 = inlined_call_operand.vmem [shape: bf16[128,128], index: 0, kind: input, shape index: {}]   ;;  %s336_s1 = inlined_call_operand.vmem [shape: f32[1,128], index: 1, kind: input, shape index: {}]   ;;  %s337_s2 = inlined_call_operand.vmem [shape: f32[1,128], index: 2, kind: input, shape index: {}]   ;;  %s338_s3 = inlined_call_operand.vmem [shape: f32[128,128], index: 3, kind: output, shape index: {}]  }
   0x1   :  { %v163_v0 = vld [vmem:[%s335_s0] sm:$0xff]   ;;  %v194_v4 = vld [vmem:[%s335_s0 + $0x8] sm:$0xff]   ;;  %v195_v5 = vld [vmem:[%s335_s0 + $0x10] sm:$0xff]  }
   0x2   :  { %v227_v1 = vld [vmem:[%s336_s1] ss:$0 sm:$0xff]  ;;  %v164_v2 = vunpack.c.l.bf16 %v163_v0  ;;  %v165_v3 = vunpack.c.h.bf16 %v163_v0  ;;  %v196_v6 = vld [vmem:[%s335_s0 + $0x18] sm:$0xff]   ;;  %v168_v8 = vunpack.c.l.bf16 %v194_v4  ;;  %v169_v9 = vunpack.c.h.bf16 %v194_v4  ;;  %v198_v36 = vld [vmem:[%s335_s0 + $0x28] sm:$0xff]  }
   0x3   :  { %v241_v7 = vld [vmem:[%s337_s2] ss:$0 sm:$0xff]  ;;  %v172_v10 = vunpack.c.l.bf16 %v195_v5  ;;  %v173_v11 = vunpack.c.h.bf16 %v195_v5  ;;  %v176_v14 = vunpack.c.l.bf16 %v196_v6  ;;  %v177_v15 = vunpack.c.h.bf16 %v196_v6  ;;  %v199_v48 = vld [vmem:[%s335_s0 + $0x30] sm:$0xff]   ;;  %v200_v55 = vld [vmem:[%s335_s0 + $0x38] sm:$0xff]  }
   0x4   :  { %v53_v12 = vmul.f32 %v164_v2, %v227_v1  ;;  %v54_v13 = vmul.f32 %v165_v3, %v227_v1  ;;  %v55_v16 = vmul.f32 %v168_v8, %v227_v1  ;;  %v56_v17 = vmul.f32 %v169_v9, %v227_v1  ;;  %v197_v28 = vld [vmem:[%s335_s0 + $0x20] sm:$0xff]  }
   0x5   :  { %v57_v18 = vmul.f32 %v172_v10, %v227_v1  ;;  %v58_v19 = vmul.f32 %v173_v11, %v227_v1  ;;  %v59_v22 = vmul.f32 %v176_v14, %v227_v1  ;;  %v60_v23 = vmul.f32 %v177_v15, %v227_v1 }
   0x6   :  { %v76_v20 = vadd.f32 %v241_v7, %v53_v12  ;;  %v77_v21 = vadd.f32 %v241_v7, %v54_v13  ;;  %v78_v24 = vadd.f32 %v241_v7, %v55_v16  ;;  %v79_v25 = vadd.f32 %v241_v7, %v56_v17 }
   0x7   :  { %v80_v26 = vadd.f32 %v241_v7, %v57_v18  ;;  %v81_v27 = vadd.f32 %v241_v7, %v58_v19  ;;  %v82_v41 = vadd.f32 %v241_v7, %v59_v22  ;;  %v83_v42 = vadd.f32 %v241_v7, %v60_v23 }
   0x8   :  { %vm92_vm0 = vcmp.gt.f32.partialorder %v76_v20, 0.0  ;;  %v108_v29 = vmul.f32 0.2, %v76_v20  ;;  %vm93_vm1 = vcmp.gt.f32.partialorder %v77_v21, 0.0  ;;  %v109_v30 = vmul.f32 0.2, %v77_v21 }
   0x9   :  { %vm94_vm2 = vcmp.gt.f32.partialorder %v78_v24, 0.0  ;;  %v110_v31 = vmul.f32 0.2, %v78_v24  ;;  %vm95_vm3 = vcmp.gt.f32.partialorder %v79_v25, 0.0  ;;  %v111_v32 = vmul.f32 0.2, %v79_v25 }
   0xa   :  { %v124_v33 = vsel %vm92_vm0, %v76_v20, %v108_v29  ;;  %v125_v34 = vsel %vm93_vm1, %v77_v21, %v109_v30  ;;  %vm96_vm4 = vcmp.gt.f32.partialorder %v80_v26, 0.0  ;;  %v112_v35 = vmul.f32 0.2, %v80_v26 }
   0xb   :  { %140 = vst [vmem:[%s338_s3] sm:$0xff] %v124_v33  ;;  %141 = vst [vmem:[%s338_s3 + $0x8] sm:$0xff] %v125_v34  ;;  %v126_v37 = vsel %vm94_vm2, %v78_v24, %v110_v31  ;;  %v127_v38 = vsel %vm95_vm3, %v79_v25, %v111_v32  ;;  %vm97_vm5 = vcmp.gt.f32.partialorder %v81_v27, 0.0  ;;  %v113_v39 = vmul.f32 0.2, %v81_v27 }
   0xc   :  { %142 = vst [vmem:[%s338_s3 + $0x10] sm:$0xff] %v126_v37  ;;  %143 = vst [vmem:[%s338_s3 + $0x18] sm:$0xff] %v127_v38  ;;  %v128_v40 = vsel %vm96_vm4, %v80_v26, %v112_v35  ;;  %v180_v43 = vunpack.c.l.bf16 %v197_v28  ;;  %v181_v45 = vunpack.c.h.bf16 %v197_v28  ;;  %v184_v46 = vunpack.c.l.bf16 %v198_v36 }
   0xd   :  { %144 = vst [vmem:[%s338_s3 + $0x20] sm:$0xff] %v128_v40  ;;  %v129_v44 = vsel %vm97_vm5, %v81_v27, %v113_v39  ;;  %v185_v47 = vunpack.c.h.bf16 %v198_v36  ;;  %vm98_vm6 = vcmp.gt.f32.partialorder %v82_v41, 0.0  ;;  %v114_v49 = vmul.f32 0.2, %v82_v41 }
   0xe   :  { %145 = vst [vmem:[%s338_s3 + $0x28] sm:$0xff] %v129_v44  ;;  %vm99_vm7 = vcmp.gt.f32.partialorder %v83_v42, 0.0  ;;  %v115_v50 = vmul.f32 0.2, %v83_v42  ;;  %v61_v51 = vmul.f32 %v180_v43, %v227_v1  ;;  %v62_v52 = vmul.f32 %v181_v45, %v227_v1 }
   0xf   :  { %v63_v53 = vmul.f32 %v184_v46, %v227_v1  ;;  %v64_v54 = vmul.f32 %v185_v47, %v227_v1  ;;  %v130_v56 = vsel %vm98_vm6, %v82_v41, %v114_v49  ;;  %v188_v58 = vunpack.c.l.bf16 %v199_v48 }
  0x10   :  { %v131_v57 = vsel %vm99_vm7, %v83_v42, %v115_v50  ;;  %v189_v59 = vunpack.c.h.bf16 %v199_v48  ;;  %146 = vst [vmem:[%s338_s3 + $0x30] sm:$0xff] %v130_v56  ;;  %v84_v60 = vadd.f32 %v241_v7, %v61_v51  ;;  %v85_v61 = vadd.f32 %v241_v7, %v62_v52 }
  0x11   :  { %147 = vst [vmem:[%s338_s3 + $0x38] sm:$0xff] %v131_v57  ;;  %v86_v62 = vadd.f32 %v241_v7, %v63_v53  ;;  %v87_v63 = vadd.f32 %v241_v7, %v64_v54  ;;  %v65_v0 = vmul.f32 %v188_v58, %v227_v1  ;;  %v192_v3 = vunpack.c.l.bf16 %v200_v55 }
  0x12   :  { %v66_v2 = vmul.f32 %v189_v59, %v227_v1  ;;  %v193_v4 = vunpack.c.h.bf16 %v200_v55  ;;  %vm100_vm8 = vcmp.gt.f32.partialorder %v84_v60, 0.0  ;;  %v116_v5 = vmul.f32 0.2, %v84_v60 }
  0x13   :  { %vm101_vm9 = vcmp.gt.f32.partialorder %v85_v61, 0.0  ;;  %v117_v6 = vmul.f32 0.2, %v85_v61  ;;  %vm102_vm10 = vcmp.gt.f32.partialorder %v86_v62, 0.0  ;;  %v118_v8 = vmul.f32 0.2, %v86_v62 }
  0x14   :  { %vm103_vm11 = vcmp.gt.f32.partialorder %v87_v63, 0.0  ;;  %v119_v9 = vmul.f32 0.2, %v87_v63  ;;  %v132_v10 = vsel %vm100_vm8, %v84_v60, %v116_v5  ;;  %v88_v12 = vadd.f32 %v241_v7, %v65_v0 }
  0x15   :  { %v133_v11 = vsel %vm101_vm9, %v85_v61, %v117_v6  ;;  %v89_v13 = vadd.f32 %v241_v7, %v66_v2  ;;  %148 = vst [vmem:[%s338_s3 + $0x40] sm:$0xff] %v132_v10  ;;  %v134_v14 = vsel %vm102_vm10, %v86_v62, %v118_v8  ;;  %v67_v16 = vmul.f32 %v192_v3, %v227_v1 }
  0x16   :  { %149 = vst [vmem:[%s338_s3 + $0x48] sm:$0xff] %v133_v11  ;;  %v135_v15 = vsel %vm103_vm11, %v87_v63, %v119_v9  ;;  %v68_v17 = vmul.f32 %v193_v4, %v227_v1  ;;  %150 = vst [vmem:[%s338_s3 + $0x50] sm:$0xff] %v134_v14  ;;  %vm104_vm12 = vcmp.gt.f32.partialorder %v88_v12, 0.0  ;;  %v120_v18 = vmul.f32 0.2, %v88_v12 }
  0x17   :  { %151 = vst [vmem:[%s338_s3 + $0x58] sm:$0xff] %v135_v15  ;;  %vm105_vm13 = vcmp.gt.f32.partialorder %v89_v13, 0.0  ;;  %v121_v19 = vmul.f32 0.2, %v89_v13  ;;  %v90_v20 = vadd.f32 %v241_v7, %v67_v16 }
  0x18   :  { %v91_v21 = vadd.f32 %v241_v7, %v68_v17  ;;  %v136_v22 = vsel %vm104_vm12, %v88_v12, %v120_v18 }
  0x19   :  { %v137_v23 = vsel %vm105_vm13, %v89_v13, %v121_v19  ;;  %152 = vst [vmem:[%s338_s3 + $0x60] sm:$0xff] %v136_v22  ;;  %vm106_vm14 = vcmp.gt.f32.partialorder %v90_v20, 0.0  ;;  %v122_v1 = vmul.f32 0.2, %v90_v20 }
  0x1a   :  { %153 = vst [vmem:[%s338_s3 + $0x68] sm:$0xff] %v137_v23  ;;  %vm107_vm15 = vcmp.gt.f32.partialorder %v91_v21, 0.0  ;;  %v123_v24 = vmul.f32 0.2, %v91_v21 }
  0x1b   :  { %v138_v25 = vsel %vm106_vm14, %v90_v20, %v122_v1 }
  0x1c   :  { %v139_v26 = vsel %vm107_vm15, %v91_v21, %v123_v24  ;;  %154 = vst [vmem:[%s338_s3 + $0x70] sm:$0xff] %v138_v25 }
  0x1d   :  { %155 = vst [vmem:[%s338_s3 + $0x78] sm:$0xff] %v139_v26 }

// kernel: discriminator_block.2
= control target key start
LH: loop header
LB: loop body
LE: loop exit
PB: predicated region body
PF: predicated region fallthrough
CT: control target
= control target key end

     0   :  { %s2515_s15 = smov 0   ;;  %s2517_s16 = smov 0   ;;  %s2799_s0 = inlined_call_operand.vmem [shape: bf16[2,36,9,4], index: 0, kind: input, shape index: {}]   ;;  %s2800_s1 = inlined_call_operand.vmem [shape: bf16[9,4,128], index: 1, kind: input, shape index: {}]   ;;  %s2801_s2 = inlined_call_operand.vmem [shape: bf16[2,64,128], index: 2, kind: output, shape index: {0}]   ;;  %s2802_s3 = inlined_call_operand.vmem [shape: f32[2,1,128], index: 3, kind: output, shape index: {1}]   ;;  %s2803_s4 = inlined_call_operand.vmem [shape: f32[2,1,128], index: 4, kind: output, shape index: {2}]  }
   0x1   :  { %s2519_s17 = smov 0  }
   0x2 LB: > { %s27_s18 = sadd.s32 1, %s2484_s16  ;;  %p2072_p0 = scmp.ge.s32.totalorder %s2488_s17, 1  ;;  %s2488_s17 = sphi %s2519_s17, %s15_s17   ;;  %s2484_s16 = sphi %s2517_s16, %s2807_s16   ;;  %s2480_s15 = sphi %s2515_s15, %s2806_s15  }
   0x3   : > { %p29_p1 = scmp.ge.s32.totalorder %s27_s18, 2  ;;  %p194_p2 = scmp.lt.s32.totalorder %s2488_s17, 3 }
   0x5   : > { %s2809_s18 = smov (%p29_p1, %s27_s18), 0  ;;  %p195_p3 = pnand %p2072_p0, %p194_p2 }
   0x6   : > { %p239_p4 = scmp.lt.s32.totalorder (!%p195_p3), %s2480_s15, 1 }
   0x7   : > { %198 = sbr.rel (%p195_p3) target bundleno = 315 (0x13b), region = 28 }
   0xc   : > { %v277_v0 = vld [vmem:[%s2800_s1] sm:$0x3]  ;;  %vm311_vm0 = vcmask 1041408   ;;  %v2092_v2 = vld [vmem:[%s2800_s1 + $0x2] sm:$0x3]  ;;  %s2811_s15 = smov (!%p239_p4, %s2480_s15), 1 }
   0xd   : > { %2408 = vmatprep.subr.msk.bf16.mxu1 %vm311_vm0, %v277_v0  ;;  %2407 = vmatprep.subr.msk.bf16.mxu0 %vm311_vm0, %v277_v0  ;;  %v313_v1 = vsel %vm311_vm0, %v277_v0, 0  ;;  %v2101_v3 = vld [vmem:[%s2800_s1 + $0x4] sm:$0x3]  ;;  %s2417_s25 = smul.u32 288, %s2811_s15  ;;  %vm298_vm1 = vcmask 31744   ;;  %v432_v4 = vsel %vm311_vm0, %v2092_v2, 0 }
   0xe   : > { %2406 = vmatpush3.bf16.msra.mxu1 %v313_v1  ;;  %2316 = vmatpush3.bf16.msra.mxu0 %v313_v1  ;;  %v681_v5 = vsel %vm311_vm0, %v2101_v3, 0  ;;  %v2118_v7 = vld [vmem:[%s2800_s1 + $0x6] sm:$0x3]  ;;  %v2135_v8 = vld [vmem:[%s2800_s1 + $0x8] sm:$0x3]  ;;  %s2238_s19 = sshll.u32 %s2811_s15, 5 }
   0xf   : > { %2409 = vmatprep.subr.msk.bf16.mxu1 %vm311_vm0, %v2092_v2  ;;  %2410 = vmatprep.subr.msk.bf16.mxu0 %vm311_vm0, %v2101_v3  ;;  %s2553_s28 = scalar_lea.vmem %s2799_s0, %s2417_s25  ;;  %vm539_vm2 = vsmask.f32 3328  ;;  %vm540_vm3 = vsmask.f32 7440  ;;  %v816_v13 = vsel %vm311_vm0, %v2118_v7, 0  ;;  %v2574_v14 = vsel %vm311_vm0, %v2135_v8, 0  ;;  %s2776_s22 = scalar_lea.vmem %s2801_s2, %s2238_s19 }
  0x10   : > { %v2442_v6 = vld [vmem:[%s2553_s28] ss:$8 sps:$4 sm:$0xff]   ;;  %v2444_v10 = vld [vmem:[%s2553_s28 + $0x10] ss:$8 sps:$4 sm:$0xff]   ;;  %v524_v16 = vld [vmem:[%s2553_s28 + $0x4] sm:$0x1]  ;;  %s261_s25 = scalar_lea.vmem %s2802_s3, %s2811_s15 }
  0x11   : > { %v2443_v9 = vld [vmem:[%s2553_s28 + $0x20] ss:$8 sps:$4 sm:$0xff]   ;;  %2317 = vmatprep.mubr.msk.bf16.mxu0 %vm298_vm1, %v2442_v6  ;;  %v2445_v11 = vld [vmem:[%s2553_s28 + $0x30] ss:$8 sps:$4 sm:$0xff]   ;;  %v526_v19 = vld [vmem:[%s2553_s28 + $0xc] sm:$0x1] }
  0x12   : > { %2321 = vmatprep.mubr.msk.bf16.mxu1 %vm298_vm1, %v2443_v9  ;;  %2318 = vmatmul.mubr.msk.bf16.vlgmr.msra.gmra.mxu0 %vm298_vm1, %v2444_v10  ;;  %v2446_v12 = vld [vmem:[%s2553_s28 + $0x48] ss:$8 sps:$4 sm:$0xff]   ;;  %v523_v15 = vld [vmem:[%s2553_s28] sm:$0xf]  ;;  %v552_v22 = vshll.u32 %v524_v16, 16  ;;  %v566_v25 = vshll.u32 %v526_v19, 16  ;;  %vm2595_vm4 = vmor %vm539_vm2, %vm540_vm3 }
  0x13   : > { %2322 = vmatmul.mubr.msk.bf16.vlgmr.msra.gmra.mxu1 %vm298_vm1, %v2445_v11  ;;  %2336 = vmatpush3.bf16.msra.mxu0 %v681_v5  ;;  %v525_v17 = vld [vmem:[%s2553_s28 + $0x8] sm:$0xf]  ;;  %v2447_v18 = vld [vmem:[%s2553_s28 + $0x58] ss:$8 sps:$4 sm:$0xff]   ;;  %v543_v20 = vshrl.u32 %v523_v15, 16  ;;  %v546_v21 = vshll.u32 %v523_v15, 16 }
  0x14   : > { %2326 = vmatpush3.bf16.msra.mxu1 %v432_v4  ;;  %2327 = vmatprep.mubr.msk.bf16.mxu1 %vm298_vm1, %v2446_v12  ;;  %v557_v23 = vshrl.u32 %v525_v17, 16  ;;  %v560_v24 = vshll.u32 %v525_v17, 16  ;;  %v527_v26 = vld [vmem:[%s2553_s28 + $0x10] sm:$0xf]  ;;  %v528_v27 = vld [vmem:[%s2553_s28 + $0x14] sm:$0x1] }
  0x15   : > { %2411 = vmatprep.subr.msk.bf16.mxu1 %vm311_vm0, %v2118_v7  ;;  %2412 = vmatprep.subr.msk.bf16.mxu0 %vm311_vm0, %v2135_v8  ;;  %v545_v28 = vrot.slane %v543_v20, 4  ;;  %v548_v29 = vrot.slane %v546_v21, 5  ;;  %v554_v30 = vrot.slane %v552_v22, 5  ;;  %v529_v32 = vld [vmem:[%s2553_s28 + $0x18] sm:$0xf]  ;;  %v568_v34 = vrot.slane %v566_v25, 5 }
  0x16   : > { %v559_v31 = vrot.slane %v557_v23, 4  ;;  %v562_v33 = vrot.slane %v560_v24, 5  ;;  %v530_v35 = vld [vmem:[%s2553_s28 + $0x1c] sm:$0x1]  ;;  %v571_v36 = vshrl.u32 %v527_v26, 16  ;;  %v574_v37 = vshll.u32 %v527_v26, 16 }
  0x17   : > { %v2591_v38 = vld [vmem:[%s2800_s1 + $0xa] sm:$0x3]  ;;  %v549_v39 = vor.u32 %v548_v29, %v545_v28  ;;  %v580_v40 = vshll.u32 %v528_v27, 16  ;;  %v585_v41 = vshrl.u32 %v529_v32, 16  ;;  %v588_v42 = vshll.u32 %v529_v32, 16 }
  0x18   : > { %v563_v44 = vor.u32 %v562_v33, %v559_v31  ;;  %v573_v45 = vrot.slane %v571_v36, 4  ;;  %v576_v46 = vrot.slane %v574_v37, 5  ;;  %v594_v47 = vshll.u32 %v530_v35, 16  ;;  %v2448_v52 = vld [vmem:[%s2553_s28 + $0x68] ss:$8 sps:$4 sm:$0xff]  }
  0x19   : > { %v550_v48 = vrot.slane %v549_v39, 4  ;;  %v582_v49 = vrot.slane %v580_v40, 5  ;;  %v587_v50 = vrot.slane %v585_v41, 4  ;;  %v590_v51 = vrot.slane %v588_v42, 5  ;;  %v2449_v58 = vld [vmem:[%s2553_s28 + $0x78] ss:$8 sps:$4 sm:$0xff]  }
  0x1a   : > { %v564_v53 = vrot.slane %v563_v44, 4  ;;  %v577_v54 = vor.u32 %v576_v46, %v573_v45  ;;  %v596_v55 = vrot.slane %v594_v47, 5  ;;  %v531_v59 = vld [vmem:[%s2553_s28 + $0x20] sm:$0xf]  ;;  %v532_v60 = vld [vmem:[%s2553_s28 + $0x24] sm:$0x1] }
  0x1b   : > { %2328 = vmatmul.mubr.msk.bf16.vlgmr.msra.gmra.mxu1 %vm298_vm1, %v2447_v18  ;;  %v555_v56 = vsel %vm2595_vm4, %v550_v48, %v554_v30  ;;  %v591_v57 = vor.u32 %v590_v51, %v587_v50  ;;  %v533_v63 = vld [vmem:[%s2553_s28 + $0x28] sm:$0xf]  ;;  %v534_v0 = vld [vmem:[%s2553_s28 + $0x2c] sm:$0x1]  ;;  %v599_v1 = vshrl.u32 %v531_v59, 16  ;;  %v602_v4 = vshll.u32 %v531_v59, 16 }
  0x1c   : > { %2346 = vmatpush3.bf16.msra.mxu1 %v816_v13  ;;  %2331 = vmatprep.mubr.msk.bf16.mxu1 %vm298_vm1, %v2448_v52  ;;  %v569_v61 = vsel %vm2595_vm4, %v564_v53, %v568_v34  ;;  %v578_v62 = vrot.slane %v577_v54, 4  ;;  %v608_v5 = vshll.u32 %v532_v60, 16  ;;  %v535_v6 = vld [vmem:[%s2553_s28 + $0x30] sm:$0xf]  ;;  %v613_v9 = vshrl.u32 %v533_v63, 16 }
  0x1d   : > { %2413 = vmatprep.subr.msk.bf16.mxu1 %vm311_vm0, %v2591_v38  ;;  %v2102_v2 = vcombine.low %v555_v56, %v569_v61  ;;  %v592_v3 = vrot.slane %v591_v57, 4  ;;  %v601_v8 = vrot.slane %v599_v1, 4  ;;  %v616_v10 = vshll.u32 %v533_v63, 16  ;;  %v536_v11 = vld [vmem:[%s2553_s28 + $0x34] sm:$0x1] }
  0x1e   : > { %v583_v7 = vsel %vm2595_vm4, %v578_v62, %v582_v49  ;;  %v604_v13 = vrot.slane %v602_v4, 5  ;;  %v610_v15 = vrot.slane %v608_v5, 5  ;;  %v622_v16 = vshll.u32 %v534_v0, 16  ;;  %v537_v17 = vld [vmem:[%s2553_s28 + $0x38] sm:$0xf] }
  0x1f   : > { %2337 = vmatprep.mubr.msk.bf16.mxu0 %vm298_vm1, %v2102_v2  ;;  %v597_v12 = vsel %vm2595_vm4, %v592_v3, %v596_v55  ;;  %v2177_v18 = vld [vmem:[%s2800_s1 + $0xc] sm:$0x3]  ;;  %v615_v20 = vrot.slane %v613_v9, 4  ;;  %v618_v21 = vrot.slane %v616_v10, 5  ;;  %v538_v22 = vld [vmem:[%s2553_s28 + $0x3c] sm:$0x1] }
  0x20   : > { %v2103_v19 = vcombine.low %v583_v7, %v597_v12  ;;  %v627_v23 = vshrl.u32 %v535_v6, 16  ;;  %v605_v24 = vor.u32 %v604_v13, %v601_v8  ;;  %v624_v25 = vrot.slane %v622_v16, 5  ;;  %v2450_v35 = vld [vmem:[%s2553_s28 + $0x90] ss:$8 sps:$4 sm:$0xff]   ;;  %v2451_v44 = vld [vmem:[%s2553_s28 + $0xa0] ss:$8 sps:$4 sm:$0xff]  }
  0x21   : > { %v630_v26 = vshll.u32 %v535_v6, 16  ;;  %v636_v27 = vshll.u32 %v536_v11, 16  ;;  %v619_v28 = vor.u32 %v618_v21, %v615_v20  ;;  %v641_v30 = vshrl.u32 %v537_v17, 16  ;;  %v2194_v51 = vld [vmem:[%s2800_s1 + $0xe] sm:$0x3] }
  0x22   : > { %2338 = vmatmul.mubr.msk.bf16.vlgmr.msra.gmra.mxu0 %vm298_vm1, %v2103_v19  ;;  %v629_v29 = vrot.slane %v627_v23, 4  ;;  %v644_v31 = vshll.u32 %v537_v17, 16  ;;  %v606_v32 = vrot.slane %v605_v24, 4  ;;  %v650_v34 = vshll.u32 %v538_v22, 16  ;;  %v2454_v53 = vld [vmem:[%s2553_s28 + $0xb0] ss:$8 sps:$4 sm:$0xff]  }
  0x23   : > { %2332 = vmatmul.mubr.msk.bf16.gmra.mxu1 %vm298_vm1, %v2449_v58  ;;  %2356 = vmatpush3.bf16.msra.mxu0 %v2574_v14  ;;  %v632_v33 = vrot.slane %v630_v26, 5  ;;  %v620_v36 = vrot.slane %v619_v28, 4  ;;  %v643_v37 = vrot.slane %v641_v30, 4  ;;  %v638_v42 = vrot.slane %v636_v27, 5  ;;  %v2455_v57 = vld [vmem:[%s2553_s28 + $0xc0] ss:$8 sps:$4 sm:$0xff]  }
  0x24   : > { %v646_v39 = vrot.slane %v644_v31, 5  ;;  %2414 = vmatprep.subr.msk.bf16.mxu0 %vm311_vm0, %v2177_v18  ;;  %v611_v40 = vsel %vm2595_vm4, %v606_v32, %v610_v15  ;;  %2347 = vmatprep.mubr.msk.bf16.mxu1 %vm298_vm1, %v2450_v35  ;;  %v652_v46 = vrot.slane %v650_v34, 5  ;;  %v1197_v49 = vsel %vm311_vm0, %v2591_v38, 0  ;;  %v2452_v38 = vld [vmem:[%s2553_s28 + $0xd8] ss:$8 sps:$4 sm:$0xff]  }
  0x25   : > { %v633_v41 = vor.u32 %v632_v33, %v629_v29  ;;  %v625_v14 = vsel %vm2595_vm4, %v620_v36, %v624_v25  ;;  %v1332_v56 = vsel %vm311_vm0, %v2177_v18, 0  ;;  %v2144_v58 = vld [vmem:[%s2553_s28 + $0x90] sm:$0xf]  ;;  %v2145_v59 = vld [vmem:[%s2553_s28 + $0x94] sm:$0x1]  ;;  %v1467_v31 = vsel %vm311_vm0, %v2194_v51, 0 }
  0x26   : > { %v647_v45 = vor.u32 %v646_v39, %v643_v37  ;;  %v2104_v47 = vcombine.low %v611_v40, %v625_v14  ;;  %v2146_v60 = vld [vmem:[%s2553_s28 + $0x98] sm:$0xf]  ;;  %v2147_v61 = vld [vmem:[%s2553_s28 + $0x9c] sm:$0x1]  ;;  %v1059_v62 = vshrl.u32 %v2144_v58, 16  ;;  %v1062_v63 = vshll.u32 %v2144_v58, 16 }
  0x27   : > { %v634_v48 = vrot.slane %v633_v41, 4  ;;  %v1068_v0 = vshll.u32 %v2145_v59, 16  ;;  %v1073_v1 = vshrl.u32 %v2146_v60, 16  ;;  %v2148_v2 = vld [vmem:[%s2553_s28 + $0xa0] sm:$0xf]  ;;  %v1076_v4 = vshll.u32 %v2146_v60, 16 }
  0x28   : > { %v648_v50 = vrot.slane %v647_v45, 4  ;;  %2341 = vmatprep.mubr.msk.bf16.mxu0 %vm298_vm1, %v2104_v47  ;;  %v2453_v3 = vld [vmem:[%s2553_s28 + $0xe8] ss:$8 sps:$4 sm:$0xff]   ;;  %v1082_v5 = vshll.u32 %v2147_v61, 16  ;;  %v2149_v6 = vld [vmem:[%s2553_s28 + $0xa4] sm:$0x1] }
  0x29   : > { %v639_v52 = vsel %vm2595_vm4, %v634_v48, %v638_v42  ;;  %v2150_v7 = vld [vmem:[%s2553_s28 + $0xa8] sm:$0xf]  ;;  %v2456_v8 = vld [vmem:[%s2553_s28 + $0xf8] ss:$8 sps:$4 sm:$0xff]   ;;  %v1061_v9 = vrot.slane %v1059_v62, 4  ;;  %v1064_v10 = vrot.slane %v1062_v63, 5 }
  0x2a   : > { %v653_v54 = vsel %vm2595_vm4, %v648_v50, %v652_v46  ;;  %v1070_v11 = vrot.slane %v1068_v0, 5  ;;  %v1075_v12 = vrot.slane %v1073_v1, 4  ;;  %v2151_v13 = vld [vmem:[%s2553_s28 + $0xac] sm:$0x1]  ;;  %v1078_v15 = vrot.slane %v1076_v4, 5 }
  0x2b   : > { %2348 = vmatmul.mubr.msk.bf16.vlgmr.msra.gmra.mxu1 %vm298_vm1, %v2451_v44  ;;  %v2105_v55 = vcombine.low %v639_v52, %v653_v54  ;;  %v1084_v16 = vrot.slane %v1082_v5, 5  ;;  %v1087_v17 = vshrl.u32 %v2148_v2, 16  ;;  %v1090_v18 = vshll.u32 %v2148_v2, 16  ;;  %v2669_v27 = vld [vmem:[%s2800_s1 + $0x10] sm:$0x3] }
  0x2c   : > { %2366 = vmatpush3.bf16.msra.mxu1 %v1197_v49  ;;  %2351 = vmatprep.mubr.msk.bf16.mxu1 %vm298_vm1, %v2454_v53  ;;  %v1065_v19 = vor.u32 %v1064_v10, %v1061_v9  ;;  %v1096_v20 = vshll.u32 %v2149_v6, 16  ;;  %v1101_v21 = vshrl.u32 %v2150_v7, 16  ;;  %v1104_v22 = vshll.u32 %v2150_v7, 16  ;;  %v2152_v39 = vld [vmem:[%s2553_s28 + $0xb0] sm:$0xf] }
  0x2d   : > { %2415 = vmatprep.subr.msk.bf16.mxu1 %vm311_vm0, %v2194_v51  ;;  %2342 = vmatmul.mubr.msk.bf16.gmra.mxu0 %vm298_vm1, %v2105_v55  ;;  %v1079_v23 = vor.u32 %v1078_v15, %v1075_v12  ;;  %v1089_v24 = vrot.slane %v1087_v17, 4  ;;  %v1092_v25 = vrot.slane %v1090_v18, 5  ;;  %v1110_v26 = vshll.u32 %v2151_v13, 16  ;;  %v2153_v40 = vld [vmem:[%s2553_s28 + $0xb4] sm:$0x1] }
  0x2e   : > { %2357 = vmatprep.mubr.msk.bf16.mxu0 %vm298_vm1, %v2452_v38  ;;  %v1066_v28 = vrot.slane %v1065_v19, 4  ;;  %v1103_v29 = vrot.slane %v1101_v21, 4  ;;  %v1106_v30 = vrot.slane %v1104_v22, 5  ;;  %v1098_v34 = vrot.slane %v1096_v20, 5  ;;  %v2154_v41 = vld [vmem:[%s2553_s28 + $0xb8] sm:$0xf] }
  0x2f   : > { %v1080_v32 = vrot.slane %v1079_v23, 4  ;;  %v1093_v33 = vor.u32 %v1092_v25, %v1089_v24  ;;  %v1112_v35 = vrot.slane %v1110_v26, 5  ;;  %v2457_v42 = vld [vmem:[%s2553_s28 + $0x108] ss:$8 sps:$4 sm:$0xff]   ;;  %v2155_v45 = vld [vmem:[%s2553_s28 + $0xbc] sm:$0x1] }
  0x30   : > { %v1071_v36 = vsel %vm2595_vm4, %v1066_v28, %v1070_v11  ;;  %v1107_v37 = vor.u32 %v1106_v30, %v1103_v29  ;;  %v1115_v46 = vshrl.u32 %v2152_v39, 16  ;;  %v1118_v47 = vshll.u32 %v2152_v39, 16  ;;  %v2458_v50 = vld [vmem:[%s2553_s28 + $0x8] ss:$8 sps:$4 sm:$0xff]   ;;  %v2156_v53 = vld [vmem:[%s2553_s28 + $0xc0] sm:$0xf] }
  0x31   : > { %v1085_v44 = vsel %vm2595_vm4, %v1080_v32, %v1084_v16  ;;  %v1094_v14 = vrot.slane %v1093_v33, 4  ;;  %v1124_v51 = vshll.u32 %v2153_v40, 16  ;;  %v1129_v52 = vshrl.u32 %v2154_v41, 16  ;;  %v2158_v62 = vld [vmem:[%s2553_s28 + $0xc8] sm:$0xf] }
  0x32   : > { %v2161_v48 = vcombine.low %v1071_v36, %v1085_v44  ;;  %v1108_v49 = vrot.slane %v1107_v37, 4  ;;  %v1117_v38 = vrot.slane %v1115_v46, 4  ;;  %v1120_v55 = vrot.slane %v1118_v47, 5  ;;  %v2159_v2 = vld [vmem:[%s2553_s28 + $0xcc] sm:$0x1] }
  0x33   : > { %2352 = vmatmul.mubr.msk.bf16.gmra.mxu1 %vm298_vm1, %v2455_v57  ;;  %v1099_v54 = vsel %vm2595_vm4, %v1094_v14, %v1098_v34  ;;  %v2157_v57 = vld [vmem:[%s2553_s28 + $0xc4] sm:$0x1]  ;;  %v1126_v59 = vrot.slane %v1124_v51, 5  ;;  %v1131_v60 = vrot.slane %v1129_v52, 4  ;;  %v1138_v61 = vshll.u32 %v2155_v45, 16 }
  0x34   : > { %2367 = vmatprep.mubr.msk.bf16.mxu1 %vm298_vm1, %v2161_v48  ;;  %v1113_v58 = vsel %vm2595_vm4, %v1108_v49, %v1112_v35  ;;  %v1121_v0 = vor.u32 %v1120_v55, %v1117_v38  ;;  %v1146_v5 = vshll.u32 %v2156_v53, 16  ;;  %v1152_v6 = vshll.u32 %v2157_v57, 16  ;;  %v2459_v16 = vld [vmem:[%s2553_s28 + $0x18] ss:$8 sps:$4 sm:$0xff]   ;;  %v2460_v29 = vld [vmem:[%s2553_s28 + $0x28] ss:$8 sps:$4 sm:$0xff]  }
  0x35   : > { %2358 = vmatmul.mubr.msk.bf16.vlgmr.msra.gmra.mxu0 %vm298_vm1, %v2453_v3  ;;  %v2162_v63 = vcombine.low %v1099_v54, %v1113_v58  ;;  %v1143_v3 = vshrl.u32 %v2156_v53, 16  ;;  %v1140_v4 = vrot.slane %v1138_v61, 5  ;;  %v1157_v7 = vshrl.u32 %v2158_v62, 16  ;;  %v2203_v30 = vld [vmem:[%s2553_s28 + $0x8] sm:$0xf] }
  0x36   : > { %2376 = vmatpush3.bf16.msra.mxu0 %v1332_v56  ;;  %2361 = vmatprep.mubr.msk.bf16.mxu0 %vm298_vm1, %v2456_v8  ;;  %v1132_v56 = vshll.u32 %v2154_v41, 16  ;;  %v1122_v8 = vrot.slane %v1121_v0, 4  ;;  %v1160_v11 = vshll.u32 %v2158_v62, 16  ;;  %v1148_v12 = vrot.slane %v1146_v5, 5  ;;  %v2462_v32 = vld [vmem:[%s2553_s28 + $0x50] ss:$8 sps:$4 sm:$0xff]  }
  0x37   : > { %2416 = vmatprep.subr.msk.bf16.mxu0 %vm311_vm0, %v2669_v27  ;;  %v1145_v10 = vrot.slane %v1143_v3, 4  ;;  %v1159_v13 = vrot.slane %v1157_v7, 4  ;;  %v1166_v15 = vshll.u32 %v2159_v2, 16  ;;  %v1154_v21 = vrot.slane %v1152_v6, 5  ;;  %v2204_v33 = vld [vmem:[%s2553_s28 + $0xc] sm:$0x1] }
  0x38   : > { %v1134_v1 = vrot.slane %v1132_v56, 5  ;;  %v1127_v17 = vsel %vm2595_vm4, %v1122_v8, %v1126_v59  ;;  %v1162_v19 = vrot.slane %v1160_v11, 5  ;;  %v1713_v25 = vsel %vm311_vm0, %v2669_v27, 0  ;;  %v2205_v34 = vld [vmem:[%s2553_s28 + $0x10] sm:$0xf] }
  0x39   : > { %v1149_v20 = vor.u32 %v1148_v12, %v1145_v10  ;;  %v1168_v24 = vrot.slane %v1166_v15, 5  ;;  %v1575_v35 = vshrl.u32 %v2203_v30, 16  ;;  %v2206_v37 = vld [vmem:[%s2553_s28 + $0x14] sm:$0x1]  ;;  %v1578_v39 = vshll.u32 %v2203_v30, 16 }
  0x3a   : > { %v1135_v9 = vor.u32 %v1134_v1, %v1131_v60  ;;  %v1163_v23 = vor.u32 %v1162_v19, %v1159_v13  ;;  %v1584_v27 = vshll.u32 %v2204_v33, 16  ;;  %v1589_v40 = vshrl.u32 %v2205_v34, 16  ;;  %v2207_v45 = vld [vmem:[%s2553_s28 + $0x18] sm:$0xf]  ;;  %v2209_v54 = vld [vmem:[%s2553_s28 + $0x20] sm:$0xf] }
  0x3b   : > { %2368 = vmatmul.mubr.msk.bf16.vlgmr.msra.gmra.mxu1 %vm298_vm1, %v2162_v63  ;;  %v1150_v28 = vrot.slane %v1149_v20, 4  ;;  %v1592_v44 = vshll.u32 %v2205_v34, 16  ;;  %v1598_v14 = vshll.u32 %v2206_v37, 16  ;;  %v1580_v47 = vrot.slane %v1578_v39, 5  ;;  %v2461_v51 = vld [vmem:[%s2553_s28 + $0x38] ss:$8 sps:$4 sm:$0xff]  }
  0x3c   : > { %2386 = vmatpush3.bf16.msra.mxu1 %v1467_v31  ;;  %v1136_v18 = vrot.slane %v1135_v9, 4  ;;  %v1164_v31 = vrot.slane %v1163_v23, 4  ;;  %v1586_v48 = vrot.slane %v1584_v27, 5  ;;  %v1591_v49 = vrot.slane %v1589_v40, 4  ;;  %v2210_v38 = vld [vmem:[%s2553_s28 + $0x24] sm:$0x1] }
  0x3d   : > { %2362 = vmatmul.mubr.msk.bf16.gmra.mxu0 %vm298_vm1, %v2457_v42  ;;  %v1155_v36 = vsel %vm2595_vm4, %v1150_v28, %v1154_v21  ;;  %v1577_v42 = vrot.slane %v1575_v35, 4  ;;  %v1594_v52 = vrot.slane %v1592_v44, 5  ;;  %v1600_v53 = vrot.slane %v1598_v14, 5  ;;  %v2463_v63 = vld [vmem:[%s2553_s28 + $0x60] ss:$8 sps:$4 sm:$0xff]  }
  0x3e   : > { %2377 = vmatprep.mubr.msk.bf16.mxu0 %vm298_vm1, %v2458_v50  ;;  %v1141_v22 = vsel %vm2595_vm4, %v1136_v18, %v1140_v4  ;;  %v1169_v41 = vsel %vm2595_vm4, %v1164_v31, %v1168_v24  ;;  %v2208_v50 = vld [vmem:[%s2553_s28 + $0x1c] sm:$0x1]  ;;  %v1603_v56 = vshrl.u32 %v2207_v45, 16  ;;  %v1606_v57 = vshll.u32 %v2207_v45, 16  ;;  %v2464_v6 = vld [vmem:[%s2553_s28 + $0x70] ss:$8 sps:$4 sm:$0xff]  }
  0x3f   : > { %v2163_v26 = vcombine.low %v1127_v17, %v1141_v22  ;;  %v2164_v46 = vcombine.low %v1155_v36, %v1169_v41  ;;  %v1581_v55 = vor.u32 %v1580_v47, %v1577_v42  ;;  %v1612_v58 = vshll.u32 %v2208_v50, 16  ;;  %v2211_v11 = vld [vmem:[%s2553_s28 + $0x28] sm:$0xf]  ;;  %v2212_v15 = vld [vmem:[%s2553_s28 + $0x2c] sm:$0x1] }
  0x40   : > { %v1595_v59 = vor.u32 %v1594_v52, %v1591_v49  ;;  %v1617_v60 = vshrl.u32 %v2209_v54, 16  ;;  %v1620_v61 = vshll.u32 %v2209_v54, 16  ;;  %v1626_v62 = vshll.u32 %v2210_v38, 16  ;;  %v2214_v17 = vld [vmem:[%s2553_s28 + $0x34] sm:$0x1] }
  0x41   : > { %2371 = vmatprep.mubr.msk.bf16.mxu1 %vm298_vm1, %v2163_v26  ;;  %v1582_v0 = vrot.slane %v1581_v55, 4  ;;  %v1605_v1 = vrot.slane %v1603_v56, 4  ;;  %v1608_v2 = vrot.slane %v1606_v57, 5  ;;  %v1614_v9 = vrot.slane %v1612_v58, 5  ;;  %v2215_v22 = vld [vmem:[%s2553_s28 + $0x38] sm:$0xf] }
  0x42   : > { %v1596_v3 = vrot.slane %v1595_v59, 4  ;;  %v1619_v4 = vrot.slane %v1617_v60, 4  ;;  %v1622_v5 = vrot.slane %v1620_v61, 5  ;;  %v1628_v10 = vrot.slane %v1626_v62, 5  ;;  %v2216_v28 = vld [vmem:[%s2553_s28 + $0x3c] sm:$0x1] }
  0x43   : > { %2372 = vmatmul.mubr.msk.bf16.gmra.mxu1 %vm298_vm1, %v2164_v46  ;;  %v1587_v7 = vsel %vm2595_vm4, %v1582_v0, %v1586_v48  ;;  %v1609_v8 = vor.u32 %v1608_v2, %v1605_v1  ;;  %v1631_v20 = vshrl.u32 %v2211_v11, 16  ;;  %v1634_v21 = vshll.u32 %v2211_v11, 16  ;;  %v2217_v33 = vld [vmem:[%s2553_s28 + $0x40] sm:$0xf]  ;;  %v2218_v39 = vld [vmem:[%s2553_s28 + $0x44] sm:$0x1] }
  0x44   : > { %2387 = vmatprep.mubr.msk.bf16.mxu1 %vm298_vm1, %v2462_v32  ;;  %v1601_v12 = vsel %vm2595_vm4, %v1596_v3, %v1600_v53  ;;  %v1623_v13 = vor.u32 %v1622_v5, %v1619_v4  ;;  %v1640_v24 = vshll.u32 %v2212_v15, 16  ;;  %v1654_v32 = vshll.u32 %v2214_v17, 16  ;;  %v2465_v47 = vld [vmem:[%s2553_s28 + $0x80] ss:$8 sps:$4 sm:$0xff]  }
  0x45   : > { %2378 = vmatmul.mubr.msk.bf16.vlgmr.msra.gmra.mxu0 %vm298_vm1, %v2459_v16  ;;  %v2213_v16 = vld [vmem:[%s2553_s28 + $0x30] sm:$0xf]  ;;  %v2220_v18 = vcombine.low %v1587_v7, %v1601_v12  ;;  %v1610_v19 = vrot.slane %v1609_v8, 4  ;;  %v1633_v30 = vrot.slane %v1631_v20, 4  ;;  %v1636_v31 = vrot.slane %v1634_v21, 5  ;;  %s267_s28 = scalar_lea.vmem %s2803_s4, %s2811_s15 }
  0x46   : > { %2396 = vmatpush3.bf16.msra.mxu0 %v1713_v25  ;;  %2381 = vmatprep.mubr.msk.bf16.mxu0 %vm298_vm1, %v2460_v29  ;;  %v1624_v23 = vrot.slane %v1623_v13, 4  ;;  %v1645_v25 = vshrl.u32 %v2213_v16, 16  ;;  %v1648_v26 = vshll.u32 %v2213_v16, 16  ;;  %v1642_v35 = vrot.slane %v1640_v24, 5 }
  0x47   : > { %v1615_v29 = vsel %vm2595_vm4, %v1610_v19, %v1614_v9  ;;  %v1637_v40 = vor.u32 %v1636_v31, %v1633_v30  ;;  %v1656_v41 = vrot.slane %v1654_v32, 5  ;;  %v1659_v42 = vshrl.u32 %v2215_v22, 16 }
  0x48   : > { %v1629_v34 = vsel %vm2595_vm4, %v1624_v23, %v1628_v10  ;;  %v1647_v36 = vrot.slane %v1645_v25, 4  ;;  %v1650_v37 = vrot.slane %v1648_v26, 5  ;;  %v1662_v14 = vshll.u32 %v2215_v22, 16 }
  0x49   : > { %v2221_v27 = vcombine.low %v1615_v29, %v1629_v34  ;;  %v1668_v45 = vshll.u32 %v2216_v28, 16  ;;  %v1673_v46 = vshrl.u32 %v2217_v33, 16  ;;  %v1638_v48 = vrot.slane %v1637_v40, 4 }
  0x4a   : > { %v1651_v44 = vor.u32 %v1650_v37, %v1647_v36  ;;  %v1661_v49 = vrot.slane %v1659_v42, 4  ;;  %v1676_v50 = vshll.u32 %v2217_v33, 16  ;;  %v1664_v53 = vrot.slane %v1662_v14, 5 }
  0x4b   : > { %2388 = vmatmul.mubr.msk.bf16.vlgmr.msra.gmra.mxu1 %vm298_vm1, %v2463_v63  ;;  %v1675_v54 = vrot.slane %v1673_v46, 4  ;;  %v1643_v38 = vsel %vm2595_vm4, %v1638_v48, %v1642_v35  ;;  %v1670_v58 = vrot.slane %v1668_v45, 5 }
  0x4c   : > { %2391 = vmatprep.mubr.msk.bf16.mxu1 %vm298_vm1, %v2464_v6  ;;  %v1652_v52 = vrot.slane %v1651_v44, 4  ;;  %v1678_v55 = vrot.slane %v1676_v50, 5  ;;  %v1665_v57 = vor.u32 %v1664_v53, %v1661_v49 }
  0x4d   : > { %2382 = vmatmul.mubr.msk.bf16.gmra.mxu0 %vm298_vm1, %v2461_v51  ;;  %v1682_v51 = vshll.u32 %v2218_v39, 16 }
  0x4e   : > { %2397 = vmatprep.mubr.msk.bf16.mxu0 %vm298_vm1, %v2220_v18  ;;  %v1657_v56 = vsel %vm2595_vm4, %v1652_v52, %v1656_v41  ;;  %v1679_v60 = vor.u32 %v1678_v55, %v1675_v54  ;;  %v1666_v62 = vrot.slane %v1665_v57, 4 }
  0x4f   : > { %v2222_v59 = vcombine.low %v1643_v38, %v1657_v56  ;;  %v1684_v61 = vrot.slane %v1682_v51, 5 }
  0x50   : > { %v1680_v63 = vrot.slane %v1679_v60, 4  ;;  %v1671_v0 = vsel %vm2595_vm4, %v1666_v62, %v1670_v58 }
  0x52   : > { %v1685_v1 = vsel %vm2595_vm4, %v1680_v63, %v1684_v61 }
  0x53   : > { %2392 = vmatmul.mubr.msk.bf16.gmra.mxu1 %vm298_vm1, %v2465_v47  ;;  %v2223_v2 = vcombine.low %v1671_v0, %v1685_v1 }
  0x55   : > { %2398 = vmatmul.mubr.msk.bf16.vlgmr.msra.gmra.mxu0 %vm298_vm1, %v2221_v27 }
  0x56   : > { %2401 = vmatprep.mubr.msk.bf16.mxu0 %vm298_vm1, %v2222_v59 }
  0x5d   : > { %2402 = vmatmul.mubr.msk.bf16.gmra.mxu0 %vm298_vm1, %v2223_v2 }
  0xd2   : > { %v2319_v5 = vpop.f32.mrf.mxu0 }
  0xd3   : > { %v2760_v3 = vpop.f32.mrf.mxu1 }
  0xd4   : > { %v349_v8 = vpop.f32.mrf.mxu0 }
  0xd5   : > { %v365_v4 = vpop.f32.mrf.mxu1 }
  0xd6   : > { %v2320_v11 = vpop.f32.mrf.mxu0 }
  0xd7   : > { %v2324_v6 = vpop.f32.mrf.mxu1 }
  0xd8   : > { %v352_v15 = vpop.f32.mrf.mxu0 }
  0xd9   : > { %v2762_v7 = vpop.f32.mrf.mxu1 }
  0xdb   : > { %v2329_v9 = vpop.f32.mrf.mxu1 }
  0xdc   : > { %v509_v48 = vadd.f32 %v2329_v9, %v2319_v5 }
  0xdd   : > { %v468_v10 = vpop.f32.mrf.mxu1 }
  0xde   : > { %v507_v46 = vadd.f32 %v468_v10, %v349_v8 }
  0xdf   : > { %v2330_v12 = vpop.f32.mrf.mxu1 }
  0xe0   : > { %v510_v49 = vadd.f32 %v2330_v12, %v2320_v11 }
  0xe1   : > { %v471_v13 = vpop.f32.mrf.mxu1 }
  0xe2   : > { %v2339_v43 = vpop.f32.mrf.mxu0  ;;  %v508_v52 = vadd.f32 %v471_v13, %v352_v15 }
  0xe3   : > { %v2333_v16 = vpop.f32.mrf.mxu1  ;;  %v758_v38 = vadd.f32 %v2339_v43, %v509_v48 }
  0xe4   : > { %v717_v18 = vpop.f32.mrf.mxu0  ;;  %v513_v5 = vadd.f32 %v2333_v16, %v2760_v3 }
  0xe5   : > { %v484_v17 = vpop.f32.mrf.mxu1  ;;  %v756_v53 = vadd.f32 %v717_v18, %v507_v46 }
  0xe6   : > { %v2340_v20 = vpop.f32.mrf.mxu0  ;;  %v511_v0 = vadd.f32 %v484_v17, %v365_v4 }
  0xe7   : > { %v2334_v19 = vpop.f32.mrf.mxu1  ;;  %v759_v55 = vadd.f32 %v2340_v20, %v510_v49 }
  0xe8   : > { %v720_v22 = vpop.f32.mrf.mxu0  ;;  %v514_v8 = vadd.f32 %v2334_v19, %v2324_v6 }
  0xe9   : > { %v487_v21 = vpop.f32.mrf.mxu1  ;;  %v757_v59 = vadd.f32 %v720_v22, %v508_v52 }
  0xea   : > { %v512_v15 = vadd.f32 %v487_v21, %v2762_v7 }
  0xeb   : > { %v2349_v23 = vpop.f32.mrf.mxu1 }
  0xec   : > { %v893_v60 = vadd.f32 %v2349_v23, %v758_v38 }
  0xed   : > { %v852_v24 = vpop.f32.mrf.mxu1  ;;  %v2343_v25 = vpop.f32.mrf.mxu0 }
  0xee   : > { %v891_v57 = vadd.f32 %v852_v24, %v756_v53  ;;  %v762_v4 = vadd.f32 %v2343_v25, %v513_v5 }
  0xef   : > { %v2350_v26 = vpop.f32.mrf.mxu1  ;;  %v733_v28 = vpop.f32.mrf.mxu0 }
  0xf0   : > { %v894_v61 = vadd.f32 %v2350_v26, %v759_v55  ;;  %v760_v20 = vadd.f32 %v733_v28, %v511_v0 }
  0xf1   : > { %v855_v29 = vpop.f32.mrf.mxu1  ;;  %v2344_v30 = vpop.f32.mrf.mxu0 }
  0xf2   : > { %v892_v1 = vadd.f32 %v855_v29, %v757_v59  ;;  %v763_v17 = vadd.f32 %v2344_v30, %v514_v8 }
  0xf3   : > { %v2353_v31 = vpop.f32.mrf.mxu1  ;;  %v736_v32 = vpop.f32.mrf.mxu0 }
  0xf4   : > { %v761_v16 = vadd.f32 %v736_v32, %v512_v15  ;;  %v897_v19 = vadd.f32 %v2353_v31, %v762_v4 }
  0xf5   : > { %v868_v33 = vpop.f32.mrf.mxu1  ;;  %v2359_v34 = vpop.f32.mrf.mxu0 }
  0xf6   : > { %v1028_v11 = vadd.f32 %v2359_v34, %v893_v60  ;;  %v895_v46 = vadd.f32 %v868_v33, %v760_v20 }
  0xf7   : > { %v2354_v35 = vpop.f32.mrf.mxu1  ;;  %v987_v36 = vpop.f32.mrf.mxu0 }
  0xf8   : > { %v1026_v9 = vadd.f32 %v987_v36, %v891_v57  ;;  %v898_v34 = vadd.f32 %v2354_v35, %v763_v17 }
  0xf9   : > { %v2360_v37 = vpop.f32.mrf.mxu0  ;;  %v871_v39 = vpop.f32.mrf.mxu1 }
  0xfa   : > { %v1029_v12 = vadd.f32 %v2360_v37, %v894_v61  ;;  %v896_v28 = vadd.f32 %v871_v39, %v761_v16 }
  0xfb   : > { %v990_v27 = vpop.f32.mrf.mxu0  ;;  %v2369_v41 = vpop.f32.mrf.mxu1 }
  0xfc   : > { %v1027_v22 = vadd.f32 %v990_v27, %v892_v1  ;;  %v1274_v23 = vadd.f32 %v2369_v41, %v1028_v11 }
  0xfd   : > { %v2764_v40 = vpop.f32.mrf.mxu0  ;;  %v1233_v44 = vpop.f32.mrf.mxu1 }
  0xfe   : > { %v1272_v43 = vadd.f32 %v1233_v44, %v1026_v9  ;;  %v1032_v33 = vadd.f32 %v2764_v40, %v897_v19 }
  0xff   : > { %v1003_v42 = vpop.f32.mrf.mxu0  ;;  %v2370_v45 = vpop.f32.mrf.mxu1 }
 0x100   : > { %v1275_v24 = vadd.f32 %v2370_v45, %v1029_v12  ;;  %v1030_v45 = vadd.f32 %v1003_v42, %v895_v46 }
 0x101   : > { %v2364_v14 = vpop.f32.mrf.mxu0  ;;  %v1236_v50 = vpop.f32.mrf.mxu1 }
 0x102   : > { %v1273_v3 = vadd.f32 %v1236_v50, %v1027_v22  ;;  %v1033_v50 = vadd.f32 %v2364_v14, %v898_v34 }
 0x103   : > { %v2766_v47 = vpop.f32.mrf.mxu0  ;;  %v2373_v56 = vpop.f32.mrf.mxu1 }
 0x104   : > { %v1278_v53 = vadd.f32 %v2373_v56, %v1032_v33 }
 0x105   : > { %v2379_v51 = vpop.f32.mrf.mxu0  ;;  %v1249_v62 = vpop.f32.mrf.mxu1 }
 0x106   : > { %v1409_v7 = vadd.f32 %v2379_v51, %v1274_v23  ;;  %v1276_v31 = vadd.f32 %v1249_v62, %v1030_v45  ;;  %v1031_v51 = vadd.f32 %v2766_v47, %v896_v28 }
 0x107   : > { %v1368_v54 = vpop.f32.mrf.mxu0  ;;  %v2374_v2 = vpop.f32.mrf.mxu1 }
 0x108   : > { %v1407_v36 = vadd.f32 %v1368_v54, %v1272_v43  ;;  %v1279_v54 = vadd.f32 %v2374_v2, %v1033_v50 }
 0x109   : > { %v2380_v58 = vpop.f32.mrf.mxu0  ;;  %v1252_v13 = vpop.f32.mrf.mxu1 }
 0x10a   : > { %v1410_v21 = vadd.f32 %v2380_v58, %v1275_v24  ;;  %v1277_v58 = vadd.f32 %v1252_v13, %v1031_v51 }
 0x10b   : > { %v1371_v63 = vpop.f32.mrf.mxu0  ;;  %v2389_v26 = vpop.f32.mrf.mxu1 }
 0x10c   : > { %v1408_v48 = vadd.f32 %v1371_v63, %v1273_v3  ;;  %v1544_v25 = vadd.f32 %v2389_v26, %v1409_v7 }
 0x10d   : > { %v2383_v10 = vpop.f32.mrf.mxu0  ;;  %v1503_v6 = vpop.f32.mrf.mxu1 }
 0x10e   : > { %v1542_v41 = vadd.f32 %v1503_v6, %v1407_v36  ;;  %v1413_v47 = vadd.f32 %v2383_v10, %v1278_v53 }
 0x10f   : > { %v1384_v18 = vpop.f32.mrf.mxu0  ;;  %v2390_v44 = vpop.f32.mrf.mxu1 }
 0x110   : > { %v1545_v30 = vadd.f32 %v2390_v44, %v1410_v21  ;;  %v1411_v14 = vadd.f32 %v1384_v18, %v1276_v31 }
 0x111   : > { %v2384_v29 = vpop.f32.mrf.mxu0  ;;  %v1506_v49 = vpop.f32.mrf.mxu1 }
 0x112   : > { %v1543_v35 = vadd.f32 %v1506_v49, %v1408_v48  ;;  %v1414_v56 = vadd.f32 %v2384_v29, %v1279_v54 }
 0x113   : > { %v1387_v37 = vpop.f32.mrf.mxu0  ;;  %v2393_v52 = vpop.f32.mrf.mxu1 }
 0x114   : > { %v1412_v5 = vadd.f32 %v1387_v37, %v1277_v58  ;;  %v1548_v8 = vadd.f32 %v2393_v52, %v1413_v47 }
 0x115   : > { %v2399_v27 = vpop.f32.mrf.mxu0  ;;  %v1519_v57 = vpop.f32.mrf.mxu1 }
 0x116   : > { %v1790_v55 = vadd.f32 %v2399_v27, %v1544_v25  ;;  %v1546_v2 = vadd.f32 %v1519_v57, %v1411_v14 }
 0x117   : > { %v1749_v32 = vpop.f32.mrf.mxu0  ;;  %v2394_v61 = vpop.f32.mrf.mxu1 }
 0x118   : > { %v1788_v39 = vadd.f32 %v1749_v32, %v1542_v41  ;;  %v1836_v12 = vmul.f32 %v1790_v55, %v1790_v55  ;;  %v1549_v43 = vadd.f32 %v2394_v61, %v1414_v56 }
 0x119   : > { %v2400_v38 = vpop.f32.mrf.mxu0  ;;  %v1522_v11 = vpop.f32.mrf.mxu1 }
 0x11a   : > { %v1791_v42 = vadd.f32 %v2400_v38, %v1545_v30  ;;  %v1834_v62 = vmul.f32 %v1788_v39, %v1788_v39  ;;  %v1547_v24 = vadd.f32 %v1522_v11, %v1412_v5 }
 0x11b   : > { %v1752_v40 = vpop.f32.mrf.mxu0 }
 0x11c   : > { %v2255_v59 = vpack.c.bf16 %v1791_v42, %v1790_v55  ;;  %v1789_v60 = vadd.f32 %v1752_v40, %v1543_v35  ;;  %v1837_v18 = vmul.f32 %v1791_v42, %v1791_v42 }
 0x11d   : > { %v2403_v9 = vpop.f32.mrf.mxu0 }
 0x11e   : > { %2267 = vst [vmem:[%s2776_s22 + $0x8] sm:$0xff] %v2255_v59   ;;  %v1812_v63 = vadd.f32 %v1789_v60, %v1788_v39  ;;  %v1835_v0 = vmul.f32 %v1789_v60, %v1789_v60  ;;  %v2250_v1 = vpack.c.bf16 %v1789_v60, %v1788_v39  ;;  %v1794_v26 = vadd.f32 %v2403_v9, %v1548_v8 }
 0x11f   : > { %v1765_v20 = vpop.f32.mrf.mxu0 }
 0x120   : > { %v1813_v13 = vadd.f32 %v1812_v63, %v1790_v55  ;;  %v1842_v15 = vadd.f32 %v1835_v0, %v1834_v62  ;;  %2251 = vst [vmem:[%s2776_s22] sm:$0xff] %v2250_v1   ;;  %v1792_v22 = vadd.f32 %v1765_v20, %v1546_v2  ;;  %v1840_v21 = vmul.f32 %v1794_v26, %v1794_v26 }
 0x121   : > { %v2404_v4 = vpop.f32.mrf.mxu0 }
 0x122   : > { %v1843_v10 = vadd.f32 %v1842_v15, %v1836_v12  ;;  %v1814_v23 = vadd.f32 %v1813_v13, %v1791_v42  ;;  %v1838_v29 = vmul.f32 %v1792_v22, %v1792_v22  ;;  %v1795_v3 = vadd.f32 %v2404_v4, %v1549_v43 }
 0x123   : > { %v1768_v6 = vpop.f32.mrf.mxu0 }
 0x124   : > { %v1815_v17 = vadd.f32 %v1814_v23, %v1792_v22  ;;  %v1844_v46 = vadd.f32 %v1843_v10, %v1837_v18  ;;  %v2265_v19 = vpack.c.bf16 %v1795_v3, %v1794_v26  ;;  %v1793_v34 = vadd.f32 %v1768_v6, %v1547_v24 }
 0x125   : > { %v1841_v27 = vmul.f32 %v1795_v3, %v1795_v3 }
 0x126   : > { %v1845_v16 = vadd.f32 %v1844_v46, %v1838_v29  ;;  %2269 = vst [vmem:[%s2776_s22 + $0x18] sm:$0xff] %v2265_v19   ;;  %v1816_v36 = vadd.f32 %v1815_v17, %v1793_v34  ;;  %v1839_v37 = vmul.f32 %v1793_v34, %v1793_v34  ;;  %v2260_v7 = vpack.c.bf16 %v1793_v34, %v1792_v22 }
 0x128   : > { %v1817_v44 = vadd.f32 %v1816_v36, %v1794_v26  ;;  %v1846_v28 = vadd.f32 %v1845_v16, %v1839_v37  ;;  %2268 = vst [vmem:[%s2776_s22 + $0x10] sm:$0xff] %v2260_v7  }
 0x12a   : > { %v1818_v41 = vadd.f32 %v1817_v44, %v1795_v3  ;;  %v1847_v45 = vadd.f32 %v1846_v28, %v1840_v21 }
 0x12c   : > { %v1819_v48 = vrot.slane %v1818_v41, 4  ;;  %v1848_v25 = vadd.f32 %v1847_v45, %v1841_v27 }
 0x12e   : > { %v1820_v30 = vadd.f32 %v1819_v48, %v1818_v41  ;;  %v1849_v49 = vrot.slane %v1848_v25, 4 }
 0x130   : > { %v1821_v33 = vrot.slane %v1820_v30, 2  ;;  %v1850_v50 = vadd.f32 %v1849_v49, %v1848_v25 }
 0x132   : > { %v1822_v32 = vadd.f32 %v1821_v33, %v1820_v30  ;;  %v1851_v31 = vrot.slane %v1850_v50, 2 }
 0x134   : > { %v1823_v35 = vrot.slane %v1822_v32, 1  ;;  %v1852_v52 = vadd.f32 %v1851_v31, %v1850_v50 }
 0x136   : > { %v1824_v51 = vadd.f32 %v1823_v35, %v1822_v32  ;;  %v1853_v53 = vrot.slane %v1852_v52, 1 }
 0x138   : > { %1825 = vst [vmem:[%s261_s25] sm:$0x1] %v1824_v51  ;;  %v1854_v54 = vadd.f32 %v1853_v53, %v1852_v52 }
 0x13a   : > { %1855 = vst [vmem:[%s267_s28] sm:$0x1] %v1854_v54 }
 0x13b PF: > { %s15_s17 = sadd.s32 1, %s2488_s17   ;;  %s2806_s15 = smov %s2484_s16 }
 0x13c   : > { %p12_p5 = scmp.ge.s32.totalorder %s15_s17, 4   ;;  %s2807_s16 = smov %s2809_s18 }
 0x13e   :  { %14 = sbr.rel (!%p12_p5) target bundleno = 2 (0x2), region = 98 }

</bundles_post_ra>
